<compile_context>
chip_gen: v7x
topology: tpu7x:2x2x1
jax: 0.10.0
libtpu: 0.0.40
codegen_flags: <defaults>
</compile_context>

<pallas_src>
import functools

import jax
import jax.numpy as jnp
import numpy as np
from jax import lax
from jax.experimental import pallas as pl
from jax.experimental.pallas import tpu as pltpu

EPS = 1e-5
LANE = 128
SUBLANE = 8


# ----------------------------- small helpers --------------------------------
def _round_up(x, m):
    return ((x + m - 1) // m) * m


def _nbytes(shape, dtype):
    return int(np.prod(shape)) * jnp.dtype(dtype).itemsize


def _pad_channels(a, cp):
    """Zero-pad the last dim of `a` to cp."""
    c = a.shape[-1]
    if c == cp:
        return a
    pad = [(0, 0)] * (a.ndim - 1) + [(0, cp - c)]
    return jnp.pad(a, pad)


def _pad_width_to(a, wp):
    """Zero-pad axis 2 (W of an NHWC tensor) on the right up to width wp."""
    cur = a.shape[2]
    if cur == wp:
        return a
    return jnp.pad(a, ((0, 0), (0, 0), (0, wp - cur), (0, 0)))


def _pad_weight(w, cin_p, cout_p):
    """Zero-pad a HWIO conv weight to (kh, kw, cin_p, cout_p)."""
    return jnp.pad(w, ((0, 0), (0, 0),
                       (0, cin_p - w.shape[2]), (0, cout_p - w.shape[3])))


def _prep_affine(v, cp):
    """Per-channel scale/bias -> zero-padded f32 (1, cp) row."""
    v = v.astype(jnp.float32)
    return jnp.pad(v, (0, cp - v.shape[0])).reshape(1, cp)


def _fold_bn(gamma, beta, mean, var):
    scale = gamma / jnp.sqrt(var + EPS)
    return scale, beta - mean * scale


def _space_to_depth_x(xp):
    """(N, Hp, Wp, C), Hp/Wp even -> (N, Hp/2, Wp/2, 4C), phase order (p,q,c)."""
    n, hp, wp, c = xp.shape
    x6 = xp.reshape(n, hp // 2, 2, wp // 2, 2, c)
    x6 = jnp.transpose(x6, (0, 1, 3, 2, 4, 5))
    return x6.reshape(n, hp // 2, wp // 2, 4 * c)


def _space_to_depth_w(w):
    """3x3 stride-2 weight (3,3,Cin,Cout) -> unit-stride 2x2 weight (2,2,4Cin,Cout)."""
    cin, cout = w.shape[2], w.shape[3]
    w6 = jnp.zeros((2, 2, 2, 2, cin, cout), w.dtype)
    for kh in range(3):
        da, p = divmod(kh, 2)
        for kw in range(3):
            db, q = divmod(kw, 2)
            w6 = w6.at[da, db, p, q].set(w[kh, kw])
    return w6.reshape(2, 2, 4 * cin, cout)


def _prefers_wide_cout():
    """True on TPU generations with a 256-wide MXU (v6e / v7x)."""
    try:
        kind = jax.devices()[0].device_kind.lower()
    except Exception:
        return False
    return ("v6" in kind) or ("v7" in kind)


def _pick_cout_tile(cout_p):
    return 256 if (_prefers_wide_cout() and cout_p % 256 == 0) else LANE


def _pick_batch_row_tiling(n, out_h, out_w_pad, k_total,
                           target_rows=512, patches_budget=6 << 20):
    """(images per tile, output rows per tile): keep the im2col patches slab
    inside `patches_budget` bytes while keeping the matmul M dim >= ~target_rows
    (folds whole images into one tile for small-spatial / deep stages)."""
    max_rows = max(SUBLANE, min(2048, patches_budget // (2 * k_total)))
    rows_img = out_h * out_w_pad
    if rows_img >= target_rows or rows_img > max_rows or n == 1:
        th = 1
        for cand in range(1, out_h + 1):
            if out_h % cand == 0 and cand * out_w_pad <= max_rows:
                th = cand
        return 1, th
    want = min(n, -(-target_rows // rows_img), max(1, max_rows // rows_img))
    nb = 1
    for cand in range(1, n + 1):
        if n % cand == 0 and cand <= want:
            nb = cand
    return nb, out_h


# ------------------------------- the kernel ----------------------------------
def _conv_bn_kernel(*refs, kh, kw, th, out_w_pad, nb, relu, res_mode,
                    has_patches):
    """Fused unit-stride KhxKw conv (im2col -> one MXU matmul per cout tile)
    + folded BN (+ fused 1x1-conv / identity residual) (+ ReLU).

    Grid = (batch-block, row-tile, cout-tile); cout is innermost ("arbitrary"),
    so the patches scratch built at ct == 0 is reused for every cout tile.
    """
    x_ref, w_ref, scale_ref, bias_ref = refs[:4]
    idx = 4
    if res_mode == "identity":
        res_ref = refs[idx]
        idx += 1
    elif res_mode == "conv":
        rx_ref, rw_ref, rscale_ref, rbias_ref = refs[idx:idx + 4]
        idx += 4
    o_ref = refs[idx]
    idx += 1
    patches_ref = refs[idx] if has_patches else None

    rt = pl.program_id(1)
    ct = pl.program_id(2)
    kc = x_ref.shape[-1]
    m_img = th * out_w_pad
    m_tot = nb * m_img
    row0 = pl.multiple_of(rt * th, th)

    if not has_patches:
        # 1x1 conv / wrapper-packed im2col: the input block already IS the
        # patches matrix — matmul straight from it (no scratch, no copies).
        taps = [x_ref[nn, pl.ds(row0, th), :, :].reshape(m_img, kc)
                for nn in range(nb)]
        patches = taps[0] if nb == 1 else jnp.concatenate(taps, axis=0)
    else:
        # Build the (M, kh*kw*kc) im2col slab ONCE per (batch-block, row-tile):
        # one VMEM read per (image, kh) row window, the kw shifts are taken
        # from the loaded value, and each tap is stored at a 128-lane-aligned
        # K offset of the scratch (full-sublane, lane-dense stores).
        @pl.when(ct == 0)
        def _build_patches():
            for nn in range(nb):
                for dh in range(kh):
                    rows = x_ref[nn, pl.ds(row0 + dh, th), :, :]  # (th, win, kc)
                    for dw in range(kw):
                        tap = rows[:, dw:dw + out_w_pad, :]
                        patches_ref[pl.ds(nn * m_img, m_img),
                                    pl.ds((dh * kw + dw) * kc, kc)] = (
                            tap.reshape(m_img, kc))

        patches = patches_ref[...]

    acc = jnp.dot(patches, w_ref[...], preferred_element_type=jnp.float32)
    out = acc * scale_ref[...] + bias_ref[...]                 # folded BN (eval)

    if res_mode == "identity":
        out = out + res_ref[...].reshape(m_tot, out.shape[-1]).astype(jnp.float32)
    elif res_mode == "conv":                                   # fused 1x1 shortcut
        r = jnp.dot(rx_ref[...].reshape(m_tot, rx_ref.shape[-1]), rw_ref[...],
                    preferred_element_type=jnp.float32)
        out = out + (r * rscale_ref[...] + rbias_ref[...])

    if relu:
        out = jnp.maximum(out, 0.0)
    o_ref[...] = out.reshape(nb, m_img, out.shape[-1]).astype(o_ref.dtype)


# ------------------------------ pallas wrapper --------------------------------
def _conv_block_call(x_prep, w2d, scale, bias, *, kh, kw, out_h, out_w_pad,
                     relu, residual=None, out_dtype=jnp.bfloat16):
    """x_prep: (N, out_h+kh-1, out_w_pad+kw-1, Kc) bf16 unit-stride input.
       w2d:    (Kh*Kw*Kc, Cout_pad) bf16.   scale/bias: (1, Cout_pad) f32.
       residual: None | ("identity", res3d) | ("conv", rx3d, rw2d, rscale, rbias)
       Returns (N, out_h, out_w_pad, Cout_pad) in out_dtype."""
    n, hin, win_p, kc = x_prep.shape
    ktot, cout_p = w2d.shape
    assert ktot == kh * kw * kc
    assert cout_p % LANE == 0 and out_w_pad % SUBLANE == 0
    assert hin == out_h + kh - 1 and win_p == out_w_pad + kw - 1

    tc = _pick_cout_tile(cout_p)
    n_ct = cout_p // tc
    nb, th = _pick_batch_row_tiling(n, out_h, out_w_pad, ktot)
    n_rt = out_h // th
    m_img = th * out_w_pad
    m_tot = nb * m_img

    res_mode = None if residual is None else residual[0]
    has_patches = (kh * kw) > 1

    kernel = functools.partial(
        _conv_bn_kernel, kh=kh, kw=kw, th=th, out_w_pad=out_w_pad, nb=nb,
        relu=relu, res_mode=res_mode, has_patches=has_patches)

    # TODO(synk): for very large feature maps on v7x (64 MiB VMEM), stream a
    # (th+kh-1)-row halo window via manual make_async_copy instead of keeping
    # the whole prepped image block resident per batch step.
    in_specs = [
        pl.BlockSpec((nb, hin, win_p, kc), lambda b, rt, ct: (b, 0, 0, 0)),
        pl.BlockSpec((ktot, tc), lambda b, rt, ct: (0, ct)),
        pl.BlockSpec((1, tc), lambda b, rt, ct: (0, ct)),
        pl.BlockSpec((1, tc), lambda b, rt, ct: (0, ct)),
    ]
    args = [x_prep, w2d, scale, bias]

    # Explicit VMEM budget (double-buffered blocks + resident patches scratch
    # + f32 working set), with headroom — matters on v7x's 64 MiB VMEM.
    vmem_est = (2 * _nbytes((nb, hin, win_p, kc), x_prep.dtype)
                + 2 * _nbytes((ktot, tc), w2d.dtype)
                + 2 * _nbytes((nb, m_img, tc), out_dtype)
                + 4 * _nbytes((1, tc), jnp.float32)
                + 2 * _nbytes((m_tot, tc), jnp.float32))
    if has_patches:
        vmem_est += _nbytes((m_tot, ktot), x_prep.dtype)

    if res_mode == "identity":
        res3d = residual[1]
        in_specs.append(pl.BlockSpec((nb, m_img, tc),
                                     lambda b, rt, ct: (b, rt, ct)))
        args.append(res3d)
        vmem_est += 2 * _nbytes((nb, m_img, tc), res3d.dtype)
    elif res_mode == "conv":
        _, rx3d, rw2d, rscale, rbias = residual
        kc_r = rx3d.shape[-1]
        in_specs += [
            pl.BlockSpec((nb, m_img, kc_r), lambda b, rt, ct: (b, rt, 0)),
            pl.BlockSpec((kc_r, tc), lambda b, rt, ct: (0, ct)),
            pl.BlockSpec((1, tc), lambda b, rt, ct: (0, ct)),
            pl.BlockSpec((1, tc), lambda b, rt, ct: (0, ct)),
        ]
        args += [rx3d, rw2d, rscale, rbias]
        vmem_est += 2 * (_nbytes((nb, m_img, kc_r), rx3d.dtype)
                         + _nbytes((kc_r, tc), rw2d.dtype))

    scratch_shapes = []
    if has_patches:
        scratch_shapes.append(pltpu.VMEM((m_tot, ktot), x_prep.dtype))

    vmem_limit = int(min(110 * 2**20, max(24 * 2**20, 2 * vmem_est)))

    out = pl.pallas_call(
        kernel,
        out_shape=jax.ShapeDtypeStruct((n, out_h * out_w_pad, cout_p), out_dtype),
        grid_spec=pltpu.PrefetchScalarGridSpec(
            num_scalar_prefetch=0,
            grid=(n // nb, n_rt, n_ct),
            in_specs=in_specs,
            out_specs=pl.BlockSpec((nb, m_img, tc),
                                   lambda b, rt, ct: (b, rt, ct)),
            scratch_shapes=tuple(scratch_shapes)),
        compiler_params=pltpu.CompilerParams(
            dimension_semantics=("parallel", "parallel", "arbitrary"),
            vmem_limit_bytes=vmem_limit),
    )(*args)
    return out.reshape(n, out_h, out_w_pad, cout_p)


# ------------------------------ BasicBlock forward ----------------------------
def basic_block_forward(x_nchw, params, stride):
    """Pallas implementation of BasicBlock.forward (eval-mode BN). NCHW in/out."""
    if stride not in (1, 2):
        raise NotImplementedError("ResNet BasicBlock uses stride 1 or 2")

    x = jnp.transpose(x_nchw.astype(jnp.bfloat16), (0, 2, 3, 1))  # NCHW -> NHWC
    n, h, w, cin = x.shape
    planes = params["conv1_w"].shape[-1]
    cpl = _round_up(planes, LANE)

    oh = (h - 1) // stride + 1
    ow = (w - 1) // stride + 1
    ow_pad = _round_up(ow, SUBLANE)

    s1, b1 = _fold_bn(*params["bn1"])
    s2, b2 = _fold_bn(*params["bn2"])

    # ---- conv1 (3x3, stride s, pad 1) + bn1 + relu --------------------------
    if cin <= 16:
        # Tiny-cin stem-like case: pack all 9 taps into K = 9*cin (padded ONCE
        # to a lane multiple) in the wrapper, so the kernel runs a single dense
        # matmul instead of a 9x lane-padded im2col (~9x less MXU/DMA work).
        xp = jnp.pad(x, ((0, 0), (1, 1), (1, 1), (0, 0)))
        taps = []
        for dh in range(3):
            for dw in range(3):
                taps.append(xp[:, dh:dh + stride * (oh - 1) + 1:stride,
                               dw:dw + stride * (ow - 1) + 1:stride, :])
        x_im = jnp.concatenate(taps, axis=-1)                 # (N, oh, ow, 9*cin)
        k1p = _round_up(9 * cin, LANE)
        x1_prep = _pad_width_to(_pad_channels(x_im, k1p), ow_pad)
        w1_2d = jnp.pad(params["conv1_w"].reshape(9 * cin, planes),
                        ((0, k1p - 9 * cin), (0, cpl - planes)))
        kh1 = kw1 = 1
    else:
        cin_p0 = _round_up(cin, LANE)
        xcp = _pad_channels(x, cin_p0)
        xp = jnp.pad(xcp, ((0, 0), (1, 1), (1, 1), (0, 0)))   # spatial pad 1
        if stride == 1:
            kh1, kw1 = 3, 3
            w1_2d = _pad_weight(params["conv1_w"], cin_p0, cpl).reshape(9 * cin_p0, cpl)
            x1_prep = _pad_width_to(xp, ow_pad + 2)
        else:  # stride == 2: space-to-depth keeps the kernel unit-stride.
            xp = jnp.pad(xp, ((0, 0), (0, xp.shape[1] % 2),
                              (0, xp.shape[2] % 2), (0, 0)))
            x1_prep = _space_to_depth_x(xp)
            kh1, kw1 = 2, 2
            w1_2d = _space_to_depth_w(
                _pad_weight(params["conv1_w"], cin_p0, cpl)).reshape(16 * cin_p0, cpl)
            x1_prep = _pad_width_to(x1_prep, ow_pad + 1)

    out1 = _conv_block_call(
        x1_prep, w1_2d.astype(jnp.bfloat16),
        _prep_affine(s1, cpl), _prep_affine(b1, cpl),
        kh=kh1, kw=kw1, out_h=oh, out_w_pad=ow_pad, relu=True,
        out_dtype=jnp.bfloat16)                               # (N, oh, ow_pad, cpl)

    # ---- conv2 (3x3, s=1, pad 1) + bn2 + shortcut + relu (one fused call) ---
    out1_t = out1[:, :, :ow, :] if ow_pad != ow else out1
    x2_prep = jnp.pad(out1_t, ((0, 0), (1, 1), (1, 1 + ow_pad - ow), (0, 0)))
    w2_2d = _pad_weight(params["conv2_w"], cpl, cpl).reshape(9 * cpl, cpl)

    cin_p = _round_up(cin, LANE)
    x_cp = _pad_channels(x, cin_p)
    if "shortcut_w" in params:
        ss, bs = _fold_bn(*params["bn_sc"])
        rx = _pad_width_to(x_cp[:, ::stride, ::stride, :], ow_pad)
        residual = ("conv",
                    rx.reshape(n, oh * ow_pad, cin_p),
                    _pad_weight(params["shortcut_w"], cin_p, cpl)
                    .reshape(cin_p, cpl).astype(jnp.bfloat16),
                    _prep_affine(ss, cpl), _prep_affine(bs, cpl))
    else:
        assert cin_p == cpl and stride == 1
        res = _pad_width_to(x_cp, ow_pad)
        residual = ("identity", res.reshape(n, oh * ow_pad, cpl))

    out = _conv_block_call(
        x2_prep, w2_2d.astype(jnp.bfloat16),
        _prep_affine(s2, cpl), _prep_affine(b2, cpl),
        kh=3, kw=3, out_h=oh, out_w_pad=ow_pad, relu=True,
        residual=residual, out_dtype=jnp.bfloat16)            # bf16 writeback

    out = out[:, :, :ow, :planes]                             # (N, oh, ow, planes)
    return jnp.transpose(out, (0, 3, 1, 2)).astype(jnp.float32)


# ----------------------------- pure-JAX reference -----------------------------
def basic_block_reference(x_nchw, params, stride):
    """Mirrors the module forward with the same bf16-in / f32-accumulate policy."""
    x = jnp.transpose(x_nchw, (0, 2, 3, 1))

    def bn(y, gamma, beta, mean, var):
        return (y - mean) / jnp.sqrt(var + EPS) * gamma + beta

    def conv(a, w, s, pad):
        return lax.conv_general_dilated(
            a.astype(jnp.bfloat16), w.astype(jnp.bfloat16), (s, s),
            [(pad, pad), (pad, pad)],
            dimension_numbers=("NHWC", "HWIO", "NHWC"),
            preferred_element_type=jnp.float32)

    out1 = jax.nn.relu(bn(conv(x, params["conv1_w"], stride, 1), *params["bn1"]))
    out1 = out1.astype(jnp.bfloat16)     # kernel keeps the intermediate in bf16
    out = bn(conv(out1, params["conv2_w"], 1, 1), *params["bn2"])
    if "shortcut_w" in params:
        sc = bn(conv(x, params["shortcut_w"], stride, 0), *params["bn_sc"])
    else:
        sc = x.astype(jnp.bfloat16).astype(jnp.float32)
    out = jax.nn.relu(out + sc)
    return jnp.transpose(out, (0, 3, 1, 2))


# ---------------------------------- main ---------------------------------------
def make_params(key, in_planes, planes, stride):
    ks = jax.random.split(key, 12)
    params = {}
    params["conv1_w"] = jax.random.normal(ks[0], (3, 3, in_planes, planes),
                                          jnp.float32) * np.sqrt(2.0 / (9 * in_planes))
    params["conv2_w"] = jax.random.normal(ks[1], (3, 3, planes, planes),
                                          jnp.float32) * np.sqrt(2.0 / (9 * planes))
    params["bn1"] = (jax.random.uniform(ks[2], (planes,), jnp.float32, 0.5, 1.5),
                     jax.random.normal(ks[3], (planes,), jnp.float32) * 0.1,
                     jax.random.normal(ks[4], (planes,), jnp.float32) * 0.1,
                     jax.random.uniform(ks[5], (planes,), jnp.float32, 0.5, 1.5))
    params["bn2"] = (jax.random.uniform(ks[6], (planes,), jnp.float32, 0.5, 1.5),
                     jax.random.normal(ks[7], (planes,), jnp.float32) * 0.1,
                     jax.random.normal(ks[8], (planes,), jnp.float32) * 0.1,
                     jax.random.uniform(ks[9], (planes,), jnp.float32, 0.5, 1.5))
    if stride != 1 or in_planes != planes:
        params["shortcut_w"] = jax.random.normal(
            ks[10], (1, 1, in_planes, planes), jnp.float32) * np.sqrt(2.0 / in_planes)
        params["bn_sc"] = (jnp.ones((planes,), jnp.float32),
                           jnp.zeros((planes,), jnp.float32),
                           jax.random.normal(ks[11], (planes,), jnp.float32) * 0.1,
                           jnp.ones((planes,), jnp.float32))
    return params


if __name__ == "__main__":
    key = jax.random.PRNGKey(0)
    fwd = jax.jit(basic_block_forward, static_argnums=2)

    configs = [
        # (N, in_planes, planes, H, W, stride)
        (2, 4, 8, 16, 16, 2),     # projection shortcut, tiny-cin packed conv1
        (2, 8, 8, 16, 16, 1),     # identity shortcut, 3x3 in-kernel im2col
        (2, 32, 32, 16, 16, 2),   # projection shortcut, space-to-depth conv1
    ]
    for (N, cin, planes, H, W, stride) in configs:
        k_x, k_p, key = jax.random.split(key, 3)
        x = jax.random.normal(k_x, (N, cin, H, W), jnp.float32)  # NCHW like PyTorch
        params = make_params(k_p, cin, planes, stride)

        out = jax.block_until_ready(fwd(x, params, stride))
        ref = jax.block_until_ready(basic_block_reference(x, params, stride))

        oh, ow = (H - 1) // stride + 1, (W - 1) // stride + 1
        assert out.shape == (N, planes, oh, ow), out.shape
        np.testing.assert_allclose(np.asarray(out), np.asarray(ref),
                                   rtol=1e-2, atol=1e-2)

    print("KERNEL_OK")
</pallas_src>

<mosaic_0001>
module attributes {stable_mosaic.version = 11 : i64} {
  func.func @_conv_bn_kernel(%arg0: i32, %arg1: i32, %arg2: i32, %arg3: memref<2x10x10x128xbf16, #tpu.memory_space<vmem>>, %arg4: memref<1152x128xbf16, #tpu.memory_space<vmem>>, %arg5: memref<1x128xf32, #tpu.memory_space<vmem>>, %arg6: memref<1x128xf32, #tpu.memory_space<vmem>>, %arg7: memref<2x64x128xbf16, #tpu.memory_space<vmem>>, %arg8: memref<128x128xbf16, #tpu.memory_space<vmem>>, %arg9: memref<1x128xf32, #tpu.memory_space<vmem>>, %arg10: memref<1x128xf32, #tpu.memory_space<vmem>>, %arg11: memref<2x64x128xbf16, #tpu.memory_space<vmem>>, %arg12: memref<128x1152xbf16, #tpu.memory_space<vmem>>) attributes {dimension_semantics = [#tpu.dimension_semantics<parallel>, #tpu.dimension_semantics<parallel>, #tpu.dimension_semantics<arbitrary>], iteration_bounds = array<i64: 1, 1, 1>, scalar_prefetch = 0 : i64, scratch_operands = 1 : i64, tpu.core_type = #tpu.core_type<tc>, window_params = [{transform_indices = @transform_0, window_bounds = array<i64: 2, 10, 10, 128>}, {transform_indices = @transform_1, window_bounds = array<i64: 1152, 128>}, {transform_indices = @transform_2, window_bounds = array<i64: 1, 128>}, {transform_indices = @transform_3, window_bounds = array<i64: 1, 128>}, {transform_indices = @transform_4, window_bounds = array<i64: 2, 64, 128>}, {transform_indices = @transform_5, window_bounds = array<i64: 128, 128>}, {transform_indices = @transform_6, window_bounds = array<i64: 1, 128>}, {transform_indices = @transform_7, window_bounds = array<i64: 1, 128>}, {transform_indices = @transform_8, window_bounds = array<i64: 2, 64, 128>}]} {
    %c8_i32 = arith.constant 8 : i32
    %0 = arith.muli %arg1, %c8_i32 : i32
    %1 = tpu.assume_multiple %0, 8 : i32
    %c0_i32 = arith.constant 0 : i32
    %2 = arith.cmpi eq, %arg2, %c0_i32 : i32
    %3 = arith.extui %2 : i1 to i32
    %c0_i32_0 = arith.constant 0 : i32
    %4 = arith.cmpi ne, %3, %c0_i32_0 : i32
    scf.if %4 {
      %c0_i32_22 = arith.constant 0 : i32
      %30 = arith.addi %1, %c0_i32_22 : i32
      %c0_23 = arith.constant 0 : index
      %31 = arith.index_cast %30 : i32 to index
      %c0_24 = arith.constant 0 : index
      %c0_25 = arith.constant 0 : index
      %32 = vector.load %arg3[%c0_23, %31, %c0_24, %c0_25] : memref<2x10x10x128xbf16, #tpu.memory_space<vmem>>, vector<1x8x10x128xbf16>
      %33 = vector.shape_cast %32 : vector<1x8x10x128xbf16> to vector<8x10x128xbf16>
      %34 = vector.extract_strided_slice %33 {offsets = [0, 0, 0], sizes = [8, 8, 128], strides = [1, 1, 1]} : vector<8x10x128xbf16> to vector<8x8x128xbf16>
      %35 = vector.shape_cast %34 : vector<8x8x128xbf16> to vector<64x128xbf16>
      %c0_26 = arith.constant 0 : index
      %c0_27 = arith.constant 0 : index
      %36 = vector.load %arg12[%c0_26, %c0_27] : memref<128x1152xbf16, #tpu.memory_space<vmem>>, vector<64x128xbf16>
      tpu.vector_store %arg12[%c0_26, %c0_27], %35 {strides = array<i32>} : memref<128x1152xbf16, #tpu.memory_space<vmem>>, vector<64x128xbf16>,
      %37 = vector.extract_strided_slice %33 {offsets = [0, 1, 0], sizes = [8, 8, 128], strides = [1, 1, 1]} : vector<8x10x128xbf16> to vector<8x8x128xbf16>
      %38 = vector.shape_cast %37 : vector<8x8x128xbf16> to vector<64x128xbf16>
      %c0_28 = arith.constant 0 : index
      %c128 = arith.constant 128 : index
      %39 = vector.load %arg12[%c0_28, %c128] : memref<128x1152xbf16, #tpu.memory_space<vmem>>, vector<64x128xbf16>
      tpu.vector_store %arg12[%c0_28, %c128], %38 {strides = array<i32>} : memref<128x1152xbf16, #tpu.memory_space<vmem>>, vector<64x128xbf16>,
      %40 = vector.extract_strided_slice %33 {offsets = [0, 2, 0], sizes = [8, 8, 128], strides = [1, 1, 1]} : vector<8x10x128xbf16> to vector<8x8x128xbf16>
      %41 = vector.shape_cast %40 : vector<8x8x128xbf16> to vector<64x128xbf16>
      %c0_29 = arith.constant 0 : index
      %c256 = arith.constant 256 : index
      %42 = vector.load %arg12[%c0_29, %c256] : memref<128x1152xbf16, #tpu.memory_space<vmem>>, vector<64x128xbf16>
      tpu.vector_store %arg12[%c0_29, %c256], %41 {strides = array<i32>} : memref<128x1152xbf16, #tpu.memory_space<vmem>>, vector<64x128xbf16>,
      %c1_i32 = arith.constant 1 : i32
      %43 = arith.addi %1, %c1_i32 : i32
      %c0_30 = arith.constant 0 : index
      %44 = arith.index_cast %43 : i32 to index
      %c0_31 = arith.constant 0 : index
      %c0_32 = arith.constant 0 : index
      %45 = vector.load %arg3[%c0_30, %44, %c0_31, %c0_32] : memref<2x10x10x128xbf16, #tpu.memory_space<vmem>>, vector<1x8x10x128xbf16>
      %46 = vector.shape_cast %45 : vector<1x8x10x128xbf16> to vector<8x10x128xbf16>
      %47 = vector.extract_strided_slice %46 {offsets = [0, 0, 0], sizes = [8, 8, 128], strides = [1, 1, 1]} : vector<8x10x128xbf16> to vector<8x8x128xbf16>
      %48 = vector.shape_cast %47 : vector<8x8x128xbf16> to vector<64x128xbf16>
      %c0_33 = arith.constant 0 : index
      %c384 = arith.constant 384 : index
      %49 = vector.load %arg12[%c0_33, %c384] : memref<128x1152xbf16, #tpu.memory_space<vmem>>, vector<64x128xbf16>
      tpu.vector_store %arg12[%c0_33, %c384], %48 {strides = array<i32>} : memref<128x1152xbf16, #tpu.memory_space<vmem>>, vector<64x128xbf16>,
      %50 = vector.extract_strided_slice %46 {offsets = [0, 1, 0], sizes = [8, 8, 128], strides = [1, 1, 1]} : vector<8x10x128xbf16> to vector<8x8x128xbf16>
      %51 = vector.shape_cast %50 : vector<8x8x128xbf16> to vector<64x128xbf16>
      %c0_34 = arith.constant 0 : index
      %c512 = arith.constant 512 : index
      %52 = vector.load %arg12[%c0_34, %c512] : memref<128x1152xbf16, #tpu.memory_space<vmem>>, vector<64x128xbf16>
      tpu.vector_store %arg12[%c0_34, %c512], %51 {strides = array<i32>} : memref<128x1152xbf16, #tpu.memory_space<vmem>>, vector<64x128xbf16>,
      %53 = vector.extract_strided_slice %46 {offsets = [0, 2, 0], sizes = [8, 8, 128], strides = [1, 1, 1]} : vector<8x10x128xbf16> to vector<8x8x128xbf16>
      %54 = vector.shape_cast %53 : vector<8x8x128xbf16> to vector<64x128xbf16>
      %c0_35 = arith.constant 0 : index
      %c640 = arith.constant 640 : index
      %55 = vector.load %arg12[%c0_35, %c640] : memref<128x1152xbf16, #tpu.memory_space<vmem>>, vector<64x128xbf16>
      tpu.vector_store %arg12[%c0_35, %c640], %54 {strides = array<i32>} : memref<128x1152xbf16, #tpu.memory_space<vmem>>, vector<64x128xbf16>,
      %c2_i32 = arith.constant 2 : i32
      %56 = arith.addi %1, %c2_i32 : i32
      %c0_36 = arith.constant 0 : index
      %57 = arith.index_cast %56 : i32 to index
      %c0_37 = arith.constant 0 : index
      %c0_38 = arith.constant 0 : index
      %58 = vector.load %arg3[%c0_36, %57, %c0_37, %c0_38] : memref<2x10x10x128xbf16, #tpu.memory_space<vmem>>, vector<1x8x10x128xbf16>
      %59 = vector.shape_cast %58 : vector<1x8x10x128xbf16> to vector<8x10x128xbf16>
      %60 = vector.extract_strided_slice %59 {offsets = [0, 0, 0], sizes = [8, 8, 128], strides = [1, 1, 1]} : vector<8x10x128xbf16> to vector<8x8x128xbf16>
      %61 = vector.shape_cast %60 : vector<8x8x128xbf16> to vector<64x128xbf16>
      %c0_39 = arith.constant 0 : index
      %c768 = arith.constant 768 : index
      %62 = vector.load %arg12[%c0_39, %c768] : memref<128x1152xbf16, #tpu.memory_space<vmem>>, vector<64x128xbf16>
      tpu.vector_store %arg12[%c0_39, %c768], %61 {strides = array<i32>} : memref<128x1152xbf16, #tpu.memory_space<vmem>>, vector<64x128xbf16>,
      %63 = vector.extract_strided_slice %59 {offsets = [0, 1, 0], sizes = [8, 8, 128], strides = [1, 1, 1]} : vector<8x10x128xbf16> to vector<8x8x128xbf16>
      %64 = vector.shape_cast %63 : vector<8x8x128xbf16> to vector<64x128xbf16>
      %c0_40 = arith.constant 0 : index
      %c896 = arith.constant 896 : index
      %65 = vector.load %arg12[%c0_40, %c896] : memref<128x1152xbf16, #tpu.memory_space<vmem>>, vector<64x128xbf16>
      tpu.vector_store %arg12[%c0_40, %c896], %64 {strides = array<i32>} : memref<128x1152xbf16, #tpu.memory_space<vmem>>, vector<64x128xbf16>,
      %66 = vector.extract_strided_slice %59 {offsets = [0, 2, 0], sizes = [8, 8, 128], strides = [1, 1, 1]} : vector<8x10x128xbf16> to vector<8x8x128xbf16>
      %67 = vector.shape_cast %66 : vector<8x8x128xbf16> to vector<64x128xbf16>
      %c0_41 = arith.constant 0 : index
      %c1024 = arith.constant 1024 : index
      %68 = vector.load %arg12[%c0_41, %c1024] : memref<128x1152xbf16, #tpu.memory_space<vmem>>, vector<64x128xbf16>
      tpu.vector_store %arg12[%c0_41, %c1024], %67 {strides = array<i32>} : memref<128x1152xbf16, #tpu.memory_space<vmem>>, vector<64x128xbf16>,
      %c0_i32_42 = arith.constant 0 : i32
      %69 = arith.addi %1, %c0_i32_42 : i32
      %c1 = arith.constant 1 : index
      %70 = arith.index_cast %69 : i32 to index
      %c0_43 = arith.constant 0 : index
      %c0_44 = arith.constant 0 : index
      %71 = vector.load %arg3[%c1, %70, %c0_43, %c0_44] : memref<2x10x10x128xbf16, #tpu.memory_space<vmem>>, vector<1x8x10x128xbf16>
      %72 = vector.shape_cast %71 : vector<1x8x10x128xbf16> to vector<8x10x128xbf16>
      %73 = vector.extract_strided_slice %72 {offsets = [0, 0, 0], sizes = [8, 8, 128], strides = [1, 1, 1]} : vector<8x10x128xbf16> to vector<8x8x128xbf16>
      %74 = vector.shape_cast %73 : vector<8x8x128xbf16> to vector<64x128xbf16>
      %c64 = arith.constant 64 : index
      %c0_45 = arith.constant 0 : index
      %75 = vector.load %arg12[%c64, %c0_45] : memref<128x1152xbf16, #tpu.memory_space<vmem>>, vector<64x128xbf16>
      tpu.vector_store %arg12[%c64, %c0_45], %74 {strides = array<i32>} : memref<128x1152xbf16, #tpu.memory_space<vmem>>, vector<64x128xbf16>,
      %76 = vector.extract_strided_slice %72 {offsets = [0, 1, 0], sizes = [8, 8, 128], strides = [1, 1, 1]} : vector<8x10x128xbf16> to vector<8x8x128xbf16>
      %77 = vector.shape_cast %76 : vector<8x8x128xbf16> to vector<64x128xbf16>
      %c64_46 = arith.constant 64 : index
      %c128_47 = arith.constant 128 : index
      %78 = vector.load %arg12[%c64_46, %c128_47] : memref<128x1152xbf16, #tpu.memory_space<vmem>>, vector<64x128xbf16>
      tpu.vector_store %arg12[%c64_46, %c128_47], %77 {strides = array<i32>} : memref<128x1152xbf16, #tpu.memory_space<vmem>>, vector<64x128xbf16>,
      %79 = vector.extract_strided_slice %72 {offsets = [0, 2, 0], sizes = [8, 8, 128], strides = [1, 1, 1]} : vector<8x10x128xbf16> to vector<8x8x128xbf16>
      %80 = vector.shape_cast %79 : vector<8x8x128xbf16> to vector<64x128xbf16>
      %c64_48 = arith.constant 64 : index
      %c256_49 = arith.constant 256 : index
      %81 = vector.load %arg12[%c64_48, %c256_49] : memref<128x1152xbf16, #tpu.memory_space<vmem>>, vector<64x128xbf16>
      tpu.vector_store %arg12[%c64_48, %c256_49], %80 {strides = array<i32>} : memref<128x1152xbf16, #tpu.memory_space<vmem>>, vector<64x128xbf16>,
      %c1_i32_50 = arith.constant 1 : i32
      %82 = arith.addi %1, %c1_i32_50 : i32
      %c1_51 = arith.constant 1 : index
      %83 = arith.index_cast %82 : i32 to index
      %c0_52 = arith.constant 0 : index
      %c0_53 = arith.constant 0 : index
      %84 = vector.load %arg3[%c1_51, %83, %c0_52, %c0_53] : memref<2x10x10x128xbf16, #tpu.memory_space<vmem>>, vector<1x8x10x128xbf16>
      %85 = vector.shape_cast %84 : vector<1x8x10x128xbf16> to vector<8x10x128xbf16>
      %86 = vector.extract_strided_slice %85 {offsets = [0, 0, 0], sizes = [8, 8, 128], strides = [1, 1, 1]} : vector<8x10x128xbf16> to vector<8x8x128xbf16>
      %87 = vector.shape_cast %86 : vector<8x8x128xbf16> to vector<64x128xbf16>
      %c64_54 = arith.constant 64 : index
      %c384_55 = arith.constant 384 : index
      %88 = vector.load %arg12[%c64_54, %c384_55] : memref<128x1152xbf16, #tpu.memory_space<vmem>>, vector<64x128xbf16>
      tpu.vector_store %arg12[%c64_54, %c384_55], %87 {strides = array<i32>} : memref<128x1152xbf16, #tpu.memory_space<vmem>>, vector<64x128xbf16>,
      %89 = vector.extract_strided_slice %85 {offsets = [0, 1, 0], sizes = [8, 8, 128], strides = [1, 1, 1]} : vector<8x10x128xbf16> to vector<8x8x128xbf16>
      %90 = vector.shape_cast %89 : vector<8x8x128xbf16> to vector<64x128xbf16>
      %c64_56 = arith.constant 64 : index
      %c512_57 = arith.constant 512 : index
      %91 = vector.load %arg12[%c64_56, %c512_57] : memref<128x1152xbf16, #tpu.memory_space<vmem>>, vector<64x128xbf16>
      tpu.vector_store %arg12[%c64_56, %c512_57], %90 {strides = array<i32>} : memref<128x1152xbf16, #tpu.memory_space<vmem>>, vector<64x128xbf16>,
      %92 = vector.extract_strided_slice %85 {offsets = [0, 2, 0], sizes = [8, 8, 128], strides = [1, 1, 1]} : vector<8x10x128xbf16> to vector<8x8x128xbf16>
      %93 = vector.shape_cast %92 : vector<8x8x128xbf16> to vector<64x128xbf16>
      %c64_58 = arith.constant 64 : index
      %c640_59 = arith.constant 640 : index
      %94 = vector.load %arg12[%c64_58, %c640_59] : memref<128x1152xbf16, #tpu.memory_space<vmem>>, vector<64x128xbf16>
      tpu.vector_store %arg12[%c64_58, %c640_59], %93 {strides = array<i32>} : memref<128x1152xbf16, #tpu.memory_space<vmem>>, vector<64x128xbf16>,
      %c2_i32_60 = arith.constant 2 : i32
      %95 = arith.addi %1, %c2_i32_60 : i32
      %c1_61 = arith.constant 1 : index
      %96 = arith.index_cast %95 : i32 to index
      %c0_62 = arith.constant 0 : index
      %c0_63 = arith.constant 0 : index
      %97 = vector.load %arg3[%c1_61, %96, %c0_62, %c0_63] : memref<2x10x10x128xbf16, #tpu.memory_space<vmem>>, vector<1x8x10x128xbf16>
      %98 = vector.shape_cast %97 : vector<1x8x10x128xbf16> to vector<8x10x128xbf16>
      %99 = vector.extract_strided_slice %98 {offsets = [0, 0, 0], sizes = [8, 8, 128], strides = [1, 1, 1]} : vector<8x10x128xbf16> to vector<8x8x128xbf16>
      %100 = vector.shape_cast %99 : vector<8x8x128xbf16> to vector<64x128xbf16>
      %c64_64 = arith.constant 64 : index
      %c768_65 = arith.constant 768 : index
      %101 = vector.load %arg12[%c64_64, %c768_65] : memref<128x1152xbf16, #tpu.memory_space<vmem>>, vector<64x128xbf16>
      tpu.vector_store %arg12[%c64_64, %c768_65], %100 {strides = array<i32>} : memref<128x1152xbf16, #tpu.memory_space<vmem>>, vector<64x128xbf16>,
      %102 = vector.extract_strided_slice %98 {offsets = [0, 1, 0], sizes = [8, 8, 128], strides = [1, 1, 1]} : vector<8x10x128xbf16> to vector<8x8x128xbf16>
      %103 = vector.shape_cast %102 : vector<8x8x128xbf16> to vector<64x128xbf16>
      %c64_66 = arith.constant 64 : index
      %c896_67 = arith.constant 896 : index
      %104 = vector.load %arg12[%c64_66, %c896_67] : memref<128x1152xbf16, #tpu.memory_space<vmem>>, vector<64x128xbf16>
      tpu.vector_store %arg12[%c64_66, %c896_67], %103 {strides = array<i32>} : memref<128x1152xbf16, #tpu.memory_space<vmem>>, vector<64x128xbf16>,
      %105 = vector.extract_strided_slice %98 {offsets = [0, 2, 0], sizes = [8, 8, 128], strides = [1, 1, 1]} : vector<8x10x128xbf16> to vector<8x8x128xbf16>
      %106 = vector.shape_cast %105 : vector<8x8x128xbf16> to vector<64x128xbf16>
      %c64_68 = arith.constant 64 : index
      %c1024_69 = arith.constant 1024 : index
      %107 = vector.load %arg12[%c64_68, %c1024_69] : memref<128x1152xbf16, #tpu.memory_space<vmem>>, vector<64x128xbf16>
      tpu.vector_store %arg12[%c64_68, %c1024_69], %106 {strides = array<i32>} : memref<128x1152xbf16, #tpu.memory_space<vmem>>, vector<64x128xbf16>,
    } else {
    }
    %c0 = arith.constant 0 : index
    %c0_1 = arith.constant 0 : index
    %5 = vector.load %arg12[%c0, %c0_1] : memref<128x1152xbf16, #tpu.memory_space<vmem>>, vector<128x1152xbf16>
    %c0_2 = arith.constant 0 : index
    %c0_3 = arith.constant 0 : index
    %6 = vector.load %arg4[%c0_2, %c0_3] : memref<1152x128xbf16, #tpu.memory_space<vmem>>, vector<1152x128xbf16>
    %cst = arith.constant dense<0.000000e+00> : vector<128x128xf32>
    %7 = tpu.matmul %5, %6, %cst {dimension_numbers = #tpu.dot_dimension_numbers<[1], [0], [0], [1], [0, 0, 1, 1], [], []>} : vector<128x1152xbf16>, vector<1152x128xbf16>, vector<128x128xf32> -> vector<128x128xf32>
    %c0_4 = arith.constant 0 : index
    %c0_5 = arith.constant 0 : index
    %8 = vector.load %arg5[%c0_4, %c0_5] : memref<1x128xf32, #tpu.memory_space<vmem>>, vector<1x128xf32>
    %9 = vector.broadcast %8 : vector<1x128xf32> to vector<128x128xf32>
    %10 = arith.mulf %7, %9 : vector<128x128xf32>
    %c0_6 = arith.constant 0 : index
    %c0_7 = arith.constant 0 : index
    %11 = vector.load %arg6[%c0_6, %c0_7] : memref<1x128xf32, #tpu.memory_space<vmem>>, vector<1x128xf32>
    %12 = vector.broadcast %11 : vector<1x128xf32> to vector<128x128xf32>
    %13 = arith.addf %10, %12 : vector<128x128xf32>
    %c0_8 = arith.constant 0 : index
    %c0_9 = arith.constant 0 : index
    %c0_10 = arith.constant 0 : index
    %14 = vector.load %arg7[%c0_8, %c0_9, %c0_10] : memref<2x64x128xbf16, #tpu.memory_space<vmem>>, vector<2x64x128xbf16>
    %15 = vector.shape_cast %14 : vector<2x64x128xbf16> to vector<128x128xbf16>
    %c0_11 = arith.constant 0 : index
    %c0_12 = arith.constant 0 : index
    %16 = vector.load %arg8[%c0_11, %c0_12] : memref<128x128xbf16, #tpu.memory_space<vmem>>, vector<128x128xbf16>
    %cst_13 = arith.constant dense<0.000000e+00> : vector<128x128xf32>
    %17 = tpu.matmul %15, %16, %cst_13 {dimension_numbers = #tpu.dot_dimension_numbers<[1], [0], [0], [1], [0, 0, 1, 1], [], []>} : vector<128x128xbf16>, vector<128x128xbf16>, vector<128x128xf32> -> vector<128x128xf32>
    %c0_14 = arith.constant 0 : index
    %c0_15 = arith.constant 0 : index
    %18 = vector.load %arg9[%c0_14, %c0_15] : memref<1x128xf32, #tpu.memory_space<vmem>>, vector<1x128xf32>
    %19 = vector.broadcast %18 : vector<1x128xf32> to vector<128x128xf32>
    %20 = arith.mulf %17, %19 : vector<128x128xf32>
    %c0_16 = arith.constant 0 : index
    %c0_17 = arith.constant 0 : index
    %21 = vector.load %arg10[%c0_16, %c0_17] : memref<1x128xf32, #tpu.memory_space<vmem>>, vector<1x128xf32>
    %22 = vector.broadcast %21 : vector<1x128xf32> to vector<128x128xf32>
    %23 = arith.addf %20, %22 : vector<128x128xf32>
    %24 = arith.addf %13, %23 : vector<128x128xf32>
    %cst_18 = arith.constant 0.000000e+00 : f32
    %25 = vector.broadcast %cst_18 : f32 to vector<128x128xf32>
    %26 = arith.maximumf %24, %25 : vector<128x128xf32>
    %27 = vector.shape_cast %26 : vector<128x128xf32> to vector<2x64x128xf32>
    %28 = arith.truncf %27 : vector<2x64x128xf32> to vector<2x64x128xbf16>
    %c0_19 = arith.constant 0 : index
    %c0_20 = arith.constant 0 : index
    %c0_21 = arith.constant 0 : index
    %29 = vector.load %arg11[%c0_19, %c0_20, %c0_21] : memref<2x64x128xbf16, #tpu.memory_space<vmem>>, vector<2x64x128xbf16>
    tpu.vector_store %arg11[%c0_19, %c0_20, %c0_21], %28 {strides = array<i32>} : memref<2x64x128xbf16, #tpu.memory_space<vmem>>, vector<2x64x128xbf16>,
    return
  }
  func.func @transform_0(%arg0: i32, %arg1: i32, %arg2: i32) -> (i32, i32, i32, i32) {
    %c0_i32 = arith.constant 0 : i32
    %c0_i32_0 = arith.constant 0 : i32
    %c0_i32_1 = arith.constant 0 : i32
    %c0_i32_2 = arith.constant 0 : i32
    return %arg0, %c0_i32, %c0_i32_0, %c0_i32_1 : i32, i32, i32, i32
  }
  func.func @transform_1(%arg0: i32, %arg1: i32, %arg2: i32) -> (i32, i32) {
    %c0_i32 = arith.constant 0 : i32
    %c0_i32_0 = arith.constant 0 : i32
    return %c0_i32, %arg2 : i32, i32
  }
  func.func @transform_2(%arg0: i32, %arg1: i32, %arg2: i32) -> (i32, i32) {
    %c0_i32 = arith.constant 0 : i32
    %c0_i32_0 = arith.constant 0 : i32
    return %c0_i32, %arg2 : i32, i32
  }
  func.func @transform_3(%arg0: i32, %arg1: i32, %arg2: i32) -> (i32, i32) {
    %c0_i32 = arith.constant 0 : i32
    %c0_i32_0 = arith.constant 0 : i32
    return %c0_i32, %arg2 : i32, i32
  }
  func.func @transform_4(%arg0: i32, %arg1: i32, %arg2: i32) -> (i32, i32, i32) {
    %c0_i32 = arith.constant 0 : i32
    %c0_i32_0 = arith.constant 0 : i32
    return %arg0, %arg1, %c0_i32 : i32, i32, i32
  }
  func.func @transform_5(%arg0: i32, %arg1: i32, %arg2: i32) -> (i32, i32) {
    %c0_i32 = arith.constant 0 : i32
    %c0_i32_0 = arith.constant 0 : i32
    return %c0_i32, %arg2 : i32, i32
  }
  func.func @transform_6(%arg0: i32, %arg1: i32, %arg2: i32) -> (i32, i32) {
    %c0_i32 = arith.constant 0 : i32
    %c0_i32_0 = arith.constant 0 : i32
    return %c0_i32, %arg2 : i32, i32
  }
  func.func @transform_7(%arg0: i32, %arg1: i32, %arg2: i32) -> (i32, i32) {
    %c0_i32 = arith.constant 0 : i32
    %c0_i32_0 = arith.constant 0 : i32
    return %c0_i32, %arg2 : i32, i32
  }
  func.func @transform_8(%arg0: i32, %arg1: i32, %arg2: i32) -> (i32, i32, i32) {
    %c0_i32 = arith.constant 0 : i32
    return %arg0, %arg1, %arg2 : i32, i32, i32
  }
}

module attributes {stable_mosaic.version = 11 : i64} {
  func.func @_conv_bn_kernel(%arg0: i32, %arg1: i32, %arg2: i32, %arg3: memref<2x8x8x128xbf16, #tpu.memory_space<vmem>>, %arg4: memref<128x128xbf16, #tpu.memory_space<vmem>>, %arg5: memref<1x128xf32, #tpu.memory_space<vmem>>, %arg6: memref<1x128xf32, #tpu.memory_space<vmem>>, %arg7: memref<2x64x128xbf16, #tpu.memory_space<vmem>>) attributes {dimension_semantics = [#tpu.dimension_semantics<parallel>, #tpu.dimension_semantics<parallel>, #tpu.dimension_semantics<arbitrary>], iteration_bounds = array<i64: 1, 1, 1>, scalar_prefetch = 0 : i64, scratch_operands = 0 : i64, tpu.core_type = #tpu.core_type<tc>, window_params = [{transform_indices = @transform_0, window_bounds = array<i64: 2, 8, 8, 128>}, {transform_indices = @transform_1, window_bounds = array<i64: 128, 128>}, {transform_indices = @transform_2, window_bounds = array<i64: 1, 128>}, {transform_indices = @transform_3, window_bounds = array<i64: 1, 128>}, {transform_indices = @transform_4, window_bounds = array<i64: 2, 64, 128>}]} {
    %c8_i32 = arith.constant 8 : i32
    %0 = arith.muli %arg1, %c8_i32 : i32
    %1 = tpu.assume_multiple %0, 8 : i32
    %c0 = arith.constant 0 : index
    %2 = arith.index_cast %1 : i32 to index
    %c0_0 = arith.constant 0 : index
    %c0_1 = arith.constant 0 : index
    %3 = vector.load %arg3[%c0, %2, %c0_0, %c0_1] : memref<2x8x8x128xbf16, #tpu.memory_space<vmem>>, vector<1x8x8x128xbf16>
    %4 = vector.shape_cast %3 : vector<1x8x8x128xbf16> to vector<8x8x128xbf16>
    %5 = vector.shape_cast %4 : vector<8x8x128xbf16> to vector<64x128xbf16>
    %c1 = arith.constant 1 : index
    %6 = arith.index_cast %1 : i32 to index
    %c0_2 = arith.constant 0 : index
    %c0_3 = arith.constant 0 : index
    %7 = vector.load %arg3[%c1, %6, %c0_2, %c0_3] : memref<2x8x8x128xbf16, #tpu.memory_space<vmem>>, vector<1x8x8x128xbf16>
    %8 = vector.shape_cast %7 : vector<1x8x8x128xbf16> to vector<8x8x128xbf16>
    %9 = vector.shape_cast %8 : vector<8x8x128xbf16> to vector<64x128xbf16>
    %10 = tpu.concatenate %5, %9 in 0 : vector<64x128xbf16>, vector<64x128xbf16> -> vector<128x128xbf16>
    %c0_4 = arith.constant 0 : index
    %c0_5 = arith.constant 0 : index
    %11 = vector.load %arg4[%c0_4, %c0_5] : memref<128x128xbf16, #tpu.memory_space<vmem>>, vector<128x128xbf16>
    %cst = arith.constant dense<0.000000e+00> : vector<128x128xf32>
    %12 = tpu.matmul %10, %11, %cst {dimension_numbers = #tpu.dot_dimension_numbers<[1], [0], [0], [1], [0, 0, 1, 1], [], []>} : vector<128x128xbf16>, vector<128x128xbf16>, vector<128x128xf32> -> vector<128x128xf32>
    %c0_6 = arith.constant 0 : index
    %c0_7 = arith.constant 0 : index
    %13 = vector.load %arg5[%c0_6, %c0_7] : memref<1x128xf32, #tpu.memory_space<vmem>>, vector<1x128xf32>
    %14 = vector.broadcast %13 : vector<1x128xf32> to vector<128x128xf32>
    %15 = arith.mulf %12, %14 : vector<128x128xf32>
    %c0_8 = arith.constant 0 : index
    %c0_9 = arith.constant 0 : index
    %16 = vector.load %arg6[%c0_8, %c0_9] : memref<1x128xf32, #tpu.memory_space<vmem>>, vector<1x128xf32>
    %17 = vector.broadcast %16 : vector<1x128xf32> to vector<128x128xf32>
    %18 = arith.addf %15, %17 : vector<128x128xf32>
    %cst_10 = arith.constant 0.000000e+00 : f32
    %19 = vector.broadcast %cst_10 : f32 to vector<128x128xf32>
    %20 = arith.maximumf %18, %19 : vector<128x128xf32>
    %21 = vector.shape_cast %20 : vector<128x128xf32> to vector<2x64x128xf32>
    %22 = arith.truncf %21 : vector<2x64x128xf32> to vector<2x64x128xbf16>
    %c0_11 = arith.constant 0 : index
    %c0_12 = arith.constant 0 : index
    %c0_13 = arith.constant 0 : index
    %23 = vector.load %arg7[%c0_11, %c0_12, %c0_13] : memref<2x64x128xbf16, #tpu.memory_space<vmem>>, vector<2x64x128xbf16>
    tpu.vector_store %arg7[%c0_11, %c0_12, %c0_13], %22 {strides = array<i32>} : memref<2x64x128xbf16, #tpu.memory_space<vmem>>, vector<2x64x128xbf16>,
    return
  }
  func.func @transform_0(%arg0: i32, %arg1: i32, %arg2: i32) -> (i32, i32, i32, i32) {
    %c0_i32 = arith.constant 0 : i32
    %c0_i32_0 = arith.constant 0 : i32
    %c0_i32_1 = arith.constant 0 : i32
    %c0_i32_2 = arith.constant 0 : i32
    return %arg0, %c0_i32, %c0_i32_0, %c0_i32_1 : i32, i32, i32, i32
  }
  func.func @transform_1(%arg0: i32, %arg1: i32, %arg2: i32) -> (i32, i32) {
    %c0_i32 = arith.constant 0 : i32
    %c0_i32_0 = arith.constant 0 : i32
    return %c0_i32, %arg2 : i32, i32
  }
  func.func @transform_2(%arg0: i32, %arg1: i32, %arg2: i32) -> (i32, i32) {
    %c0_i32 = arith.constant 0 : i32
    %c0_i32_0 = arith.constant 0 : i32
    return %c0_i32, %arg2 : i32, i32
  }
  func.func @transform_3(%arg0: i32, %arg1: i32, %arg2: i32) -> (i32, i32) {
    %c0_i32 = arith.constant 0 : i32
    %c0_i32_0 = arith.constant 0 : i32
    return %c0_i32, %arg2 : i32, i32
  }
  func.func @transform_4(%arg0: i32, %arg1: i32, %arg2: i32) -> (i32, i32, i32) {
    %c0_i32 = arith.constant 0 : i32
    return %arg0, %arg1, %arg2 : i32, i32, i32
  }
}

</mosaic_0001>

<bundles_post_ra>
// kernel: basic_block_forward.2
= control target key start
LH: loop header
LB: loop body
LE: loop exit
PB: predicated region body
PF: predicated region fallthrough
CT: control target
= control target key end

     0   :  { %s702_s1 = inlined_call_operand.vmem [shape: bf16[128,128], index: 1, kind: input, shape index: {}]   ;;  %s703_s0 = inlined_call_operand.vmem [shape: bf16[2,8,8,128], index: 0, kind: input, shape index: {}]   ;;  %s704_s2 = inlined_call_operand.vmem [shape: f32[1,128], index: 2, kind: input, shape index: {}]   ;;  %s705_s3 = inlined_call_operand.vmem [shape: f32[1,128], index: 3, kind: input, shape index: {}]   ;;  %s706_s4 = inlined_call_operand.vmem [shape: bf16[2,64,128], index: 4, kind: output, shape index: {}]  }
   0x1   :  { %v565_v0 = vld [vmem:[%s702_s1] sm:$0xff]   ;;  %v566_v1 = vld [vmem:[%s702_s1 + $0x8] sm:$0xff]   ;;  %v567_v2 = vld [vmem:[%s702_s1 + $0x10] sm:$0xff]  }
   0x2   :  { %517 = vmatprep.subr.bf16.mxu0 %v565_v0  ;;  %549 = vmatprep.subr.bf16.mxu1 %v565_v0  ;;  %v568_v3 = vld [vmem:[%s702_s1 + $0x18] sm:$0xff]   ;;  %v573_v4 = vld [vmem:[%s703_s0] sm:$0xff]   ;;  %v570_v7 = vld [vmem:[%s702_s1 + $0x28] sm:$0xff]  }
   0x3   :  { %518 = vmatpush3.bf16.msra.mxu0 %v565_v0  ;;  %557 = vmatpush3.bf16.msra.mxu1 %v565_v0  ;;  %v574_v5 = vld [vmem:[%s703_s0 + $0x20] sm:$0xff]   ;;  %v571_v8 = vld [vmem:[%s702_s1 + $0x30] sm:$0xff]   ;;  %v572_v9 = vld [vmem:[%s702_s1 + $0x38] sm:$0xff]  }
   0x4   :  { %519 = vmatprep.subr.bf16.mxu0 %v566_v1  ;;  %550 = vmatprep.subr.bf16.mxu1 %v566_v1  ;;  %v569_v6 = vld [vmem:[%s702_s1 + $0x20] sm:$0xff]   ;;  %v575_v10 = vld [vmem:[%s703_s0 + $0x8] sm:$0xff]   ;;  %v577_v12 = vld [vmem:[%s703_s0 + $0x10] sm:$0xff]  }
   0x5   :  { %533 = vmatprep.mubr.bf16.mxu0 %v573_v4  ;;  %541 = vmatprep.mubr.bf16.mxu1 %v574_v5  ;;  %v576_v11 = vld [vmem:[%s703_s0 + $0x28] sm:$0xff]   ;;  %v578_v13 = vld [vmem:[%s703_s0 + $0x30] sm:$0xff]   ;;  %v579_v14 = vld [vmem:[%s703_s0 + $0x18] sm:$0xff]  }
   0x6   :  { %v580_v15 = vld [vmem:[%s703_s0 + $0x38] sm:$0xff]   ;;  %v420_v16 = vld [vmem:[%s704_s2] ss:$0 sm:$0xff] }
   0x7   :  { %520 = vmatpush3.bf16.msra.mxu0 %v566_v1  ;;  %558 = vmatpush3.bf16.msra.mxu1 %v566_v1  ;;  %v660_v18 = vld [vmem:[%s705_s3] ss:$0 sm:$0xff] }
   0x8   :  { %521 = vmatprep.subr.bf16.mxu0 %v567_v2  ;;  %551 = vmatprep.subr.bf16.mxu1 %v567_v2 }
   0xb   :  { %522 = vmatpush3.bf16.msra.mxu0 %v567_v2  ;;  %559 = vmatpush3.bf16.msra.mxu1 %v567_v2 }
   0xc   :  { %523 = vmatprep.subr.bf16.mxu0 %v568_v3  ;;  %552 = vmatprep.subr.bf16.mxu1 %v568_v3 }
   0xf   :  { %524 = vmatpush3.bf16.msra.mxu0 %v568_v3  ;;  %560 = vmatpush3.bf16.msra.mxu1 %v568_v3 }
  0x10   :  { %525 = vmatprep.subr.bf16.mxu0 %v569_v6  ;;  %553 = vmatprep.subr.bf16.mxu1 %v569_v6 }
  0x13   :  { %526 = vmatpush3.bf16.msra.mxu0 %v569_v6  ;;  %561 = vmatpush3.bf16.msra.mxu1 %v569_v6 }
  0x14   :  { %527 = vmatprep.subr.bf16.mxu0 %v570_v7  ;;  %554 = vmatprep.subr.bf16.mxu1 %v570_v7 }
  0x17   :  { %528 = vmatpush3.bf16.msra.mxu0 %v570_v7  ;;  %562 = vmatpush3.bf16.msra.mxu1 %v570_v7 }
  0x18   :  { %529 = vmatprep.subr.bf16.mxu0 %v571_v8  ;;  %555 = vmatprep.subr.bf16.mxu1 %v571_v8 }
  0x1b   :  { %530 = vmatpush3.bf16.msra.mxu0 %v571_v8  ;;  %563 = vmatpush3.bf16.msra.mxu1 %v571_v8 }
  0x1c   :  { %531 = vmatprep.subr.bf16.mxu0 %v572_v9  ;;  %556 = vmatprep.subr.bf16.mxu1 %v572_v9 }
  0x1f   :  { %532 = vmatpush3.bf16.msra.mxu0 %v572_v9  ;;  %564 = vmatpush3.bf16.msra.mxu1 %v572_v9 }
  0x22   :  { %534 = vmatmul.mubr.bf16.vlgmr.msra.gmra.mrb[0].mxu0 %v575_v10  ;;  %542 = vmatmul.mubr.bf16.vlgmr.msra.gmra.mrb[0].mxu1 %v576_v11 }
  0x23   :  { %537 = vmatprep.mubr.bf16.mxu0 %v577_v12  ;;  %545 = vmatprep.mubr.bf16.mxu1 %v578_v13 }
  0x2a   :  { %538 = vmatmul.mubr.bf16.gmra.mrb[4].mxu0 %v579_v14  ;;  %546 = vmatmul.mubr.bf16.gmra.mrb[4].mxu1 %v580_v15 }
  0xf5   :  { %v535_v17 = vpop.f32.mrb[0].mxu0  ;;  %v543_v19 = vpop.f32.mrb[0].mxu1 }
  0xf6   :  { %v258_v20 = vmul.f32 %v535_v17, %v420_v16  ;;  %v266_v21 = vmul.f32 %v543_v19, %v420_v16  ;;  %v186_v22 = vpop.f32.mrb[1].mxu0  ;;  %v218_v23 = vpop.f32.mrb[1].mxu1 }
  0xf7   :  { %v256_v24 = vmul.f32 %v420_v16, %v186_v22  ;;  %v264_v25 = vmul.f32 %v420_v16, %v218_v23  ;;  %v536_v26 = vpop.f32.mrb[2].mxu0  ;;  %v544_v27 = vpop.f32.mrb[2].mxu1 }
  0xf8   :  { %v281_v28 = vadd.f32 %v660_v18, %v258_v20  ;;  %v289_v29 = vadd.f32 %v660_v18, %v266_v21  ;;  %v259_v30 = vmul.f32 %v536_v26, %v420_v16  ;;  %v267_v31 = vmul.f32 %v544_v27, %v420_v16  ;;  %v189_v32 = vpop.f32.mrb[3].mxu0  ;;  %v221_v33 = vpop.f32.mrb[3].mxu1 }
  0xf9   :  { %v279_v34 = vadd.f32 %v660_v18, %v256_v24  ;;  %v287_v35 = vadd.f32 %v660_v18, %v264_v25  ;;  %v257_v36 = vmul.f32 %v420_v16, %v189_v32  ;;  %v265_v37 = vmul.f32 %v420_v16, %v221_v33 }
  0xfa   :  { %v282_v38 = vadd.f32 %v660_v18, %v259_v30  ;;  %v290_v39 = vadd.f32 %v660_v18, %v267_v31  ;;  %v297_v42 = vmax.f32 %v281_v28, 0.0  ;;  %v305_v43 = vmax.f32 %v289_v29, 0.0 }
  0xfb   :  { %v280_v40 = vadd.f32 %v660_v18, %v257_v36  ;;  %v288_v41 = vadd.f32 %v660_v18, %v265_v37  ;;  %v295_v46 = vmax.f32 %v279_v34, 0.0  ;;  %v303_v47 = vmax.f32 %v287_v35, 0.0 }
  0xfc   :  { %v298_v44 = vmax.f32 %v282_v38, 0.0  ;;  %v306_v45 = vmax.f32 %v290_v39, 0.0 }
  0xfd   :  { %v296_v48 = vmax.f32 %v280_v40, 0.0  ;;  %v304_v49 = vmax.f32 %v288_v41, 0.0  ;;  %v539_v50 = vpop.f32.mrb[4].mxu0  ;;  %v547_v51 = vpop.f32.mrb[4].mxu1 }
  0xfe   :  { %v462_v52 = vpack.c.bf16 %v298_v44, %v297_v42  ;;  %v482_v53 = vpack.c.bf16 %v306_v45, %v305_v43  ;;  %v262_v54 = vmul.f32 %v539_v50, %v420_v16  ;;  %v270_v55 = vmul.f32 %v547_v51, %v420_v16  ;;  %v202_v56 = vpop.f32.mrb[5].mxu0  ;;  %v234_v57 = vpop.f32.mrb[5].mxu1 }
  0xff   :  { %v457_v58 = vpack.c.bf16 %v296_v48, %v295_v46  ;;  %v477_v59 = vpack.c.bf16 %v304_v49, %v303_v47  ;;  %v260_v60 = vmul.f32 %v420_v16, %v202_v56  ;;  %v268_v61 = vmul.f32 %v420_v16, %v234_v57  ;;  %v540_v62 = vpop.f32.mrb[6].mxu0  ;;  %v548_v63 = vpop.f32.mrb[6].mxu1 }
 0x100   :  { %494 = vst [vmem:[%s706_s4 + $0x8] sm:$0xff] %v462_v52   ;;  %498 = vst [vmem:[%s706_s4 + $0x28] sm:$0xff] %v482_v53   ;;  %v285_v0 = vadd.f32 %v660_v18, %v262_v54  ;;  %v293_v1 = vadd.f32 %v660_v18, %v270_v55  ;;  %v263_v2 = vmul.f32 %v540_v62, %v420_v16  ;;  %v205_v4 = vpop.f32.mrb[7].mxu0  ;;  %v237_v5 = vpop.f32.mrb[7].mxu1 }
 0x101   :  { %v271_v3 = vmul.f32 %v548_v63, %v420_v16  ;;  %458 = vst [vmem:[%s706_s4] sm:$0xff] %v457_v58   ;;  %497 = vst [vmem:[%s706_s4 + $0x20] sm:$0xff] %v477_v59   ;;  %v283_v6 = vadd.f32 %v660_v18, %v260_v60  ;;  %v291_v7 = vadd.f32 %v660_v18, %v268_v61 }
 0x102   :  { %v261_v8 = vmul.f32 %v420_v16, %v205_v4  ;;  %v269_v9 = vmul.f32 %v420_v16, %v237_v5  ;;  %v286_v10 = vadd.f32 %v660_v18, %v263_v2  ;;  %v301_v14 = vmax.f32 %v285_v0, 0.0 }
 0x103   :  { %v294_v11 = vadd.f32 %v660_v18, %v271_v3  ;;  %v309_v15 = vmax.f32 %v293_v1, 0.0  ;;  %v299_v20 = vmax.f32 %v283_v6, 0.0  ;;  %v307_v21 = vmax.f32 %v291_v7, 0.0 }
 0x104   :  { %v284_v12 = vadd.f32 %v660_v18, %v261_v8  ;;  %v292_v13 = vadd.f32 %v660_v18, %v269_v9  ;;  %v302_v17 = vmax.f32 %v286_v10, 0.0 }
 0x105   :  { %v310_v19 = vmax.f32 %v294_v11, 0.0 }
 0x106   :  { %v300_v22 = vmax.f32 %v284_v12, 0.0  ;;  %v308_v23 = vmax.f32 %v292_v13, 0.0  ;;  %v472_v24 = vpack.c.bf16 %v302_v17, %v301_v14 }
 0x107   :  { %v492_v25 = vpack.c.bf16 %v310_v19, %v309_v15 }
 0x108   :  { %v467_v26 = vpack.c.bf16 %v300_v22, %v299_v20  ;;  %v487_v16 = vpack.c.bf16 %v308_v23, %v307_v21  ;;  %496 = vst [vmem:[%s706_s4 + $0x18] sm:$0xff] %v472_v24  }
 0x109   :  { %500 = vst [vmem:[%s706_s4 + $0x38] sm:$0xff] %v492_v25  }
 0x10a   :  { %495 = vst [vmem:[%s706_s4 + $0x10] sm:$0xff] %v467_v26   ;;  %499 = vst [vmem:[%s706_s4 + $0x30] sm:$0xff] %v487_v16  }

// kernel: basic_block_forward.3
= control target key start
LH: loop header
LB: loop body
LE: loop exit
PB: predicated region body
PF: predicated region fallthrough
CT: control target
= control target key end

     0   :  { %vm82_vm0 = vsmask.f32 3328  ;;  %vm83_vm1 = vsmask.f32 7440  ;;  %vm225_vm2 = vcmask 1042432   ;;  %vm226_vm3 = vcmask 1046532   ;;  %s5358_s1 = inlined_call_operand.vmem [shape: bf16[1152,128], index: 1, kind: input, shape index: {}]   ;;  %s5359_s0 = inlined_call_operand.vmem [shape: bf16[2,10,10,128], index: 0, kind: input, shape index: {}]   ;;  %s5360_s5 = inlined_call_operand.vmem [shape: bf16[128,128], index: 5, kind: input, shape index: {}]   ;;  %s5361_s4 = inlined_call_operand.vmem [shape: bf16[2,64,128], index: 4, kind: input, shape index: {}]   ;;  %s5362_s6 = inlined_call_operand.vmem [shape: f32[1,128], index: 6, kind: input, shape index: {}]   ;;  %s5363_s2 = inlined_call_operand.vmem [shape: f32[1,128], index: 2, kind: input, shape index: {}]   ;;  %s5364_s7 = inlined_call_operand.vmem [shape: f32[1,128], index: 7, kind: input, shape index: {}]   ;;  %s5365_s3 = inlined_call_operand.vmem [shape: f32[1,128], index: 3, kind: input, shape index: {}]   ;;  %s5366_s8 = inlined_call_operand.vmem [shape: bf16[2,64,128], index: 8, kind: output, shape index: {}]  }
   0x1   :  { %v3771_v0 = vld [vmem:[%s5358_s1 + $0x40] sm:$0xff]   ;;  %v3775_v4 = vld [vmem:[%s5358_s1 + $0x48] sm:$0xff]   ;;  %v3779_v8 = vld [vmem:[%s5358_s1 + $0x50] sm:$0xff]  }
   0x2   :  { %v3772_v1 = vld [vmem:[%s5358_s1 + $0xc0] sm:$0xff]   ;;  %3419 = vmatprep.subr.bf16.mxu0 %v3771_v0  ;;  %v3776_v5 = vld [vmem:[%s5358_s1 + $0xc8] sm:$0xff]   ;;  %v3780_v9 = vld [vmem:[%s5358_s1 + $0xd0] sm:$0xff]  }
   0x3   :  { %v3773_v2 = vld [vmem:[%s5358_s1] sm:$0xff]   ;;  %3483 = vmatprep.subr.bf16.mxu1 %v3772_v1  ;;  %v3777_v6 = vld [vmem:[%s5358_s1 + $0x8] sm:$0xff]   ;;  %v3781_v10 = vld [vmem:[%s5358_s1 + $0x10] sm:$0xff]  }
   0x4   :  { %v3774_v3 = vld [vmem:[%s5358_s1 + $0x80] sm:$0xff]   ;;  %3420 = vmatpush3.bf16.msra.mxu0 %v3773_v2  ;;  %v3778_v7 = vld [vmem:[%s5358_s1 + $0x88] sm:$0xff]   ;;  %v3782_v11 = vld [vmem:[%s5358_s1 + $0x90] sm:$0xff]  }
   0x5   :  { %3484 = vmatpush3.bf16.msra.mxu1 %v3774_v3  ;;  %3421 = vmatprep.subr.bf16.mxu0 %v3775_v4  ;;  %v3783_v12 = vld [vmem:[%s5358_s1 + $0x58] sm:$0xff]   ;;  %v3787_v16 = vld [vmem:[%s5358_s1 + $0x60] sm:$0xff]   ;;  %v3791_v20 = vld [vmem:[%s5358_s1 + $0x68] sm:$0xff]  }
   0x6   :  { %3485 = vmatprep.subr.bf16.mxu1 %v3776_v5  ;;  %v3784_v13 = vld [vmem:[%s5358_s1 + $0xd8] sm:$0xff]   ;;  %v3788_v17 = vld [vmem:[%s5358_s1 + $0xe0] sm:$0xff]   ;;  %v3792_v21 = vld [vmem:[%s5358_s1 + $0xe8] sm:$0xff]  }
   0x7   :  { %v3785_v14 = vld [vmem:[%s5358_s1 + $0x18] sm:$0xff]   ;;  %v3789_v18 = vld [vmem:[%s5358_s1 + $0x20] sm:$0xff]   ;;  %v3793_v22 = vld [vmem:[%s5358_s1 + $0x28] sm:$0xff]  }
   0x8   :  { %3422 = vmatpush3.bf16.msra.mxu0 %v3777_v6  ;;  %v3786_v15 = vld [vmem:[%s5358_s1 + $0x98] sm:$0xff]   ;;  %v3790_v19 = vld [vmem:[%s5358_s1 + $0xa0] sm:$0xff]   ;;  %v3794_v23 = vld [vmem:[%s5358_s1 + $0xa8] sm:$0xff]  }
   0x9   :  { %3486 = vmatpush3.bf16.msra.mxu1 %v3778_v7  ;;  %3423 = vmatprep.subr.bf16.mxu0 %v3779_v8  ;;  %v3795_v24 = vld [vmem:[%s5358_s1 + $0x70] sm:$0xff]   ;;  %v3799_v28 = vld [vmem:[%s5358_s1 + $0x78] sm:$0xff]   ;;  %v4027_v32 = vld [vmem:[%s5359_s0] sm:$0xf] }
   0xa   :  { %3487 = vmatprep.subr.bf16.mxu1 %v3780_v9  ;;  %v3796_v25 = vld [vmem:[%s5358_s1 + $0xf0] sm:$0xff]   ;;  %v3800_v29 = vld [vmem:[%s5358_s1 + $0xf8] sm:$0xff]   ;;  %v39_v33 = vld [vmem:[%s5359_s0 + $0x4] sm:$0x1]  ;;  %v86_v36 = vshrl.u32 %v4027_v32, 16  ;;  %v89_v37 = vshll.u32 %v4027_v32, 16 }
   0xb   :  { %v3797_v26 = vld [vmem:[%s5358_s1 + $0x30] sm:$0xff]   ;;  %v3801_v30 = vld [vmem:[%s5358_s1 + $0x38] sm:$0xff]   ;;  %v4035_v34 = vld [vmem:[%s5359_s0 + $0x8] sm:$0xf]  ;;  %v95_v38 = vshll.u32 %v39_v33, 16  ;;  %v230_v42 = vrot.slane %v39_v33, 5 }
   0xc   :  { %3424 = vmatpush3.bf16.msra.mxu0 %v3781_v10  ;;  %v3798_v27 = vld [vmem:[%s5358_s1 + $0xb0] sm:$0xff]   ;;  %v3802_v31 = vld [vmem:[%s5358_s1 + $0xb8] sm:$0xff]   ;;  %v41_v35 = vld [vmem:[%s5359_s0 + $0xc] sm:$0x1]  ;;  %v100_v39 = vshrl.u32 %v4035_v34, 16  ;;  %v103_v40 = vshll.u32 %v4035_v34, 16 }
   0xd   :  { %3488 = vmatpush3.bf16.msra.mxu1 %v3782_v11  ;;  %3425 = vmatprep.subr.bf16.mxu0 %v3783_v12  ;;  %v109_v41 = vshll.u32 %v41_v35, 16  ;;  %v234_v43 = vrot.slane %v41_v35, 5  ;;  %v4047_v44 = vld [vmem:[%s5359_s0 + $0x8] sm:$0xf]  ;;  %v88_v45 = vrot.slane %v86_v36, 4  ;;  %v91_v46 = vrot.slane %v89_v37, 5  ;;  %vm4065_vm4 = vmor %vm82_vm0, %vm83_vm1 }
   0xe   :  { %3489 = vmatprep.subr.bf16.mxu1 %v3784_v13  ;;  %v97_v47 = vrot.slane %v95_v38, 5  ;;  %v102_v48 = vrot.slane %v100_v39, 4  ;;  %v4052_v49 = vld [vmem:[%s5359_s0 + $0x10] sm:$0xf]  ;;  %v105_v50 = vrot.slane %v103_v40, 5  ;;  %v329_v53 = vshrl.u32 %v4047_v44, 16  ;;  %vm4076_vm5 = vmor %vm225_vm2, %vm226_vm3 }
   0xf   :  { %v111_v51 = vrot.slane %v109_v41, 5  ;;  %v3084_v52 = vcombine.low %v4047_v44, %v4052_v49  ;;  %v3805_v54 = vld [vmem:[%s5358_s1 + $0x140] sm:$0xff]   ;;  %v92_v55 = vor.u32 %v91_v46, %v88_v45  ;;  %v332_v56 = vshll.u32 %v4047_v44, 16  ;;  %v3811_v36 = vld [vmem:[%s5358_s1 + $0x148] sm:$0xff]  }
  0x10   :  { %3426 = vmatpush3.bf16.msra.mxu0 %v3785_v14  ;;  %v343_v57 = vshrl.u32 %v4052_v49, 16  ;;  %v346_v58 = vshll.u32 %v4052_v49, 16  ;;  %v106_v60 = vor.u32 %v105_v50, %v102_v48  ;;  %v331_v61 = vrot.slane %v329_v53, 4  ;;  %v3807_v0 = vld [vmem:[%s5358_s1 + $0x1c0] sm:$0xff]   ;;  %v3812_v50 = vld [vmem:[%s5358_s1 + $0x108] sm:$0xff]  }
  0x11   :  { %3490 = vmatpush3.bf16.msra.mxu1 %v3786_v15  ;;  %3427 = vmatprep.subr.bf16.mxu0 %v3787_v16  ;;  %v3092_v62 = vrot.slane %v4047_v44, 9  ;;  %v3093_v63 = vrot.slane %v4052_v49, 9  ;;  %v93_v1 = vrot.slane %v92_v55, 4  ;;  %v334_v2 = vrot.slane %v332_v56, 5  ;;  %v3808_v9 = vld [vmem:[%s5358_s1 + $0x180] sm:$0xff]   ;;  %v3814_v56 = vld [vmem:[%s5358_s1 + $0x188] sm:$0xff]  }
  0x12   :  { %3491 = vmatprep.subr.bf16.mxu1 %v3788_v17  ;;  %2254 = vmatprep.mubr.bf16.mxu1 %v3084_v52  ;;  %v345_v3 = vrot.slane %v343_v57, 4  ;;  %v348_v4 = vrot.slane %v346_v58, 5  ;;  %v107_v6 = vrot.slane %v106_v60, 4  ;;  %v3056_v7 = vrot.slane %v4027_v32, 9  ;;  %v3806_v13 = vld [vmem:[%s5358_s1 + $0x100] sm:$0xff]   ;;  %v3817_v58 = vld [vmem:[%s5358_s1 + $0x150] sm:$0xff]  }
  0x13   :  { %v3057_v8 = vrot.slane %v4035_v34, 9  ;;  %v98_v10 = vsel %vm4065_vm4, %v93_v1, %v97_v47  ;;  %v335_v11 = vor.u32 %v334_v2, %v331_v61  ;;  %v3048_v15 = vcombine.low %v4027_v32, %v4035_v34  ;;  %v4162_v1 = vld [vmem:[%s5359_s0 + $0x20] sm:$0xf]  ;;  %v3818_v2 = vld [vmem:[%s5358_s1 + $0x110] sm:$0xff]  }
  0x14   :  { %3428 = vmatpush3.bf16.msra.mxu0 %v3789_v18  ;;  %v349_v12 = vor.u32 %v348_v4, %v345_v3  ;;  %v112_v14 = vsel %vm4065_vm4, %v107_v6, %v111_v51  ;;  %v231_v16 = vsel %vm4076_vm5, %v3056_v7, %v230_v42  ;;  %v4101_v18 = vld [vmem:[%s5359_s0 + $0x10] sm:$0xf]  ;;  %v3813_v51 = vld [vmem:[%s5358_s1 + $0x1c8] sm:$0xff]   ;;  %v47_v7 = vld [vmem:[%s5359_s0 + $0x24] sm:$0x1] }
  0x15   :  { %3492 = vmatpush3.bf16.msra.mxu1 %v3790_v19  ;;  %3429 = vmatprep.subr.bf16.mxu0 %v3791_v20  ;;  %v235_v17 = vsel %vm4076_vm5, %v3057_v8, %v234_v43  ;;  %v43_v19 = vld [vmem:[%s5359_s0 + $0x14] sm:$0x1]  ;;  %v4109_v20 = vld [vmem:[%s5359_s0 + $0x18] sm:$0xf]  ;;  %v3058_v48 = vrot.slane %v4101_v18, 9 }
  0x16   :  { %3493 = vmatprep.subr.bf16.mxu1 %v3792_v21  ;;  %v3052_v21 = vcombine.low %v98_v10, %v112_v14  ;;  %v131_v32 = vshll.u32 %v4109_v20, 16  ;;  %v238_v53 = vrot.slane %v43_v19, 5  ;;  %v3049_v4 = vcombine.low %v4101_v18, %v4109_v20  ;;  %v4177_v8 = vld [vmem:[%s5359_s0 + $0x28] sm:$0xf] }
  0x17   :  { %v4189_v14 = vld [vmem:[%s5359_s0 + $0x28] sm:$0xf] }
  0x18   :  { %3430 = vmatpush3.bf16.msra.mxu0 %v3793_v22  ;;  %v4111_v22 = vrot.slane %v335_v11, 4  ;;  %2157 = vmatprep.mubr.bf16.mxu0 %v3052_v21  ;;  %v133_v41 = vrot.slane %v131_v32, 5  ;;  %v239_v61 = vsel %vm4076_vm5, %v3058_v48, %v238_v53  ;;  %v142_v11 = vshrl.u32 %v4162_v1, 16  ;;  %v3820_v21 = vld [vmem:[%s5358_s1 + $0x190] sm:$0xff]  }
  0x19   :  { %3494 = vmatpush3.bf16.msra.mxu1 %v3794_v23  ;;  %3431 = vmatprep.subr.bf16.mxu0 %v3795_v24  ;;  %v4113_v23 = vrot.slane %v349_v12, 4  ;;  %v3064_v24 = vcombine.low %v231_v16, %v235_v17  ;;  %v145_v12 = vshll.u32 %v4162_v1, 16  ;;  %v156_v17 = vshrl.u32 %v4177_v8, 16 }
  0x1a   :  { %3495 = vmatprep.subr.bf16.mxu1 %v3796_v25  ;;  %v45_v25 = vld [vmem:[%s5359_s0 + $0x1c] sm:$0x1] }
  0x1b   :  { %v137_v33 = vshll.u32 %v45_v25, 16  ;;  %v242_v55 = vrot.slane %v45_v25, 5  ;;  %v147_v25 = vrot.slane %v145_v12, 5  ;;  %v4262_v12 = vld [vmem:[%s5359_s0 + $0x40] sm:$0xf] }
  0x1c   :  { %3432 = vmatpush3.bf16.msra.mxu0 %v3797_v26  ;;  %v4121_v26 = vld [vmem:[%s5359_s0 + $0x18] sm:$0xf] }
  0x1d   :  { %3496 = vmatpush3.bf16.msra.mxu1 %v3798_v27  ;;  %3433 = vmatprep.subr.bf16.mxu0 %v3799_v28  ;;  %v114_v27 = vshrl.u32 %v4101_v18, 16  ;;  %v117_v28 = vshll.u32 %v4101_v18, 16  ;;  %v357_v35 = vshrl.u32 %v4121_v26, 16  ;;  %v139_v42 = vrot.slane %v137_v33, 5 }
  0x1e   :  { %3497 = vmatprep.subr.bf16.mxu1 %v3800_v29  ;;  %v123_v29 = vshll.u32 %v43_v19, 16  ;;  %v360_v43 = vshll.u32 %v4121_v26, 16  ;;  %v159_v18 = vshll.u32 %v4177_v8, 16 }
  0x1f   :  { %v116_v37 = vrot.slane %v114_v27, 4  ;;  %v119_v38 = vrot.slane %v117_v28, 5 }
  0x20   :  { %3434 = vmatpush3.bf16.msra.mxu0 %v3801_v30  ;;  %v128_v30 = vshrl.u32 %v4109_v20, 16  ;;  %v125_v39 = vrot.slane %v123_v29, 5  ;;  %v3823_v29 = vld [vmem:[%s5358_s1 + $0x158] sm:$0xff]   ;;  %v161_v32 = vrot.slane %v159_v18, 5 }
  0x21   :  { %3498 = vmatpush3.bf16.msra.mxu1 %v3802_v31  ;;  %3547 = vmatprep.subr.bf16.mxu0 %v3805_v54  ;;  %v4129_v31 = vld [vmem:[%s5359_s0 + $0x20] sm:$0xf]  ;;  %v120_v46 = vor.u32 %v119_v38, %v116_v37  ;;  %v3059_v54 = vrot.slane %v4109_v20, 9  ;;  %v4199_v20 = vld [vmem:[%s5359_s0 + $0x30] sm:$0xf]  ;;  %v388_v37 = vshll.u32 %v4189_v14, 16 }
  0x22   :  { %3611 = vmatprep.subr.bf16.mxu1 %v3807_v0  ;;  %v3085_v34 = vcombine.low %v4121_v26, %v4129_v31  ;;  %v130_v40 = vrot.slane %v128_v30, 4  ;;  %v371_v45 = vshrl.u32 %v4129_v31, 16  ;;  %v374_v47 = vshll.u32 %v4129_v31, 16 }
  0x23   :  { %2158 = vmatmul.mubr.bf16.vlgmr.msra.gmra.mrb[0].mxu0 %v3048_v15  ;;  %v121_v57 = vrot.slane %v120_v46, 4  ;;  %v243_v0 = vsel %vm4076_vm5, %v3059_v54, %v242_v55  ;;  %v3819_v15 = vld [vmem:[%s5358_s1 + $0x1d0] sm:$0xff]   ;;  %v3086_v28 = vcombine.low %v4189_v14, %v4199_v20  ;;  %v158_v30 = vrot.slane %v156_v17, 4  ;;  %v3826_v55 = vld [vmem:[%s5358_s1 + $0x198] sm:$0xff]  }
  0x24   :  { %2255 = vmatmul.mubr.bf16.vlgmr.msra.gmra.mrb[0].mxu1 %v3064_v24  ;;  %3548 = vmatpush3.bf16.msra.mxu0 %v3806_v13  ;;  %v134_v52 = vor.u32 %v133_v41, %v130_v40  ;;  %v3065_v6 = vcombine.low %v239_v61, %v243_v0  ;;  %v151_v13 = vshll.u32 %v47_v7, 16  ;;  %v144_v24 = vrot.slane %v142_v11, 4  ;;  %v3824_v40 = vld [vmem:[%s5358_s1 + $0x118] sm:$0xff]   ;;  %v51_v61 = vld [vmem:[%s5359_s0 + $0x34] sm:$0x1] }
  0x25   :  { %3612 = vmatpush3.bf16.msra.mxu1 %v3808_v9  ;;  %2262 = vmatprep.mubr.bf16.mxu1 %v3085_v34  ;;  %v126_v3 = vsel %vm4065_vm4, %v121_v57, %v125_v39  ;;  %v49_v9 = vld [vmem:[%s5359_s0 + $0x2c] sm:$0x1]  ;;  %v385_v34 = vshrl.u32 %v4189_v14, 16  ;;  %v399_v38 = vshrl.u32 %v4199_v20, 16  ;;  %v402_v39 = vshll.u32 %v4199_v20, 16 }
  0x26   :  { %3549 = vmatprep.subr.bf16.mxu0 %v3811_v36  ;;  %3613 = vmatprep.subr.bf16.mxu1 %v3813_v51  ;;  %v135_v60 = vrot.slane %v134_v52, 4  ;;  %v165_v19 = vshll.u32 %v49_v9, 16  ;;  %v153_v27 = vrot.slane %v151_v13, 5  ;;  %v148_v36 = vor.u32 %v147_v25, %v144_v24  ;;  %v3825_v52 = vld [vmem:[%s5358_s1 + $0x1d8] sm:$0xff]   ;;  %v3829_v13 = vld [vmem:[%s5358_s1 + $0x160] sm:$0xff]  }
  0x27   :  { %v162_v41 = vor.u32 %v161_v32, %v158_v30  ;;  %v246_v46 = vrot.slane %v47_v7, 5  ;;  %v250_v51 = vrot.slane %v49_v9, 5  ;;  %v3050_v57 = vcombine.low %v4162_v1, %v4177_v8  ;;  %v4243_v0 = vld [vmem:[%s5359_s0 + $0x38] sm:$0xf] }
  0x28   :  { %3550 = vmatpush3.bf16.msra.mxu0 %v3812_v50  ;;  %v140_v10 = vsel %vm4065_vm4, %v135_v60, %v139_v42  ;;  %v167_v33 = vrot.slane %v165_v19, 5  ;;  %v3060_v42 = vrot.slane %v4162_v1, 9  ;;  %v149_v48 = vrot.slane %v148_v36, 4  ;;  %v4235_v60 = vld [vmem:[%s5359_s0 + $0x30] sm:$0xf]  ;;  %v3830_v19 = vld [vmem:[%s5358_s1 + $0x120] sm:$0xff]  }
  0x29   :  { %3614 = vmatpush3.bf16.msra.mxu1 %v3814_v56  ;;  %3551 = vmatprep.subr.bf16.mxu0 %v3817_v58  ;;  %v3053_v16 = vcombine.low %v126_v3, %v140_v10  ;;  %v3061_v50 = vrot.slane %v4177_v8, 9  ;;  %v163_v53 = vrot.slane %v162_v41, 4  ;;  %v53_v3 = vld [vmem:[%s5359_s0 + $0x3c] sm:$0x1]  ;;  %v4255_v7 = vld [vmem:[%s5359_s0 + $0x38] sm:$0xf] }
  0x2a   :  { %3615 = vmatprep.subr.bf16.mxu1 %v3819_v15  ;;  %v247_v54 = vsel %vm4076_vm5, %v3060_v42, %v246_v46  ;;  %v154_v56 = vsel %vm4065_vm4, %v149_v48, %v153_v27  ;;  %v179_v9 = vshll.u32 %v51_v61, 16  ;;  %v184_v10 = vshrl.u32 %v4243_v0, 16 }
  0x2b   :  { %2165 = vmatprep.mubr.bf16.mxu0 %v3053_v16  ;;  %v251_v58 = vsel %vm4076_vm5, %v3061_v50, %v250_v51  ;;  %v168_v1 = vsel %vm4065_vm4, %v163_v53, %v167_v33  ;;  %v187_v11 = vshll.u32 %v4243_v0, 16  ;;  %v193_v17 = vshll.u32 %v53_v3, 16  ;;  %v3831_v33 = vld [vmem:[%s5358_s1 + $0x1e0] sm:$0xff]  }
  0x2c   :  { %2263 = vmatmul.mubr.bf16.gmra.mrb[4].mxu1 %v3065_v6  ;;  %3552 = vmatpush3.bf16.msra.mxu0 %v3818_v2  ;;  %v3066_v2 = vcombine.low %v247_v54, %v251_v58  ;;  %v173_v6 = vshll.u32 %v4235_v60, 16  ;;  %v3054_v8 = vcombine.low %v154_v56, %v168_v1  ;;  %v3087_v18 = vcombine.low %v4255_v7, %v4262_v12  ;;  %v3141_v58 = vld [vmem:[%s5359_s0 + $0x54] sm:$0x1]  ;;  %v3143_v1 = vld [vmem:[%s5359_s0 + $0x5c] sm:$0x1] }
  0x2d   :  { %3616 = vmatpush3.bf16.msra.mxu1 %v3820_v21  ;;  %2166 = vmatmul.mubr.bf16.gmra.mrb[4].mxu0 %v3049_v4  ;;  %v170_v4 = vshrl.u32 %v4235_v60, 16  ;;  %v181_v21 = vrot.slane %v179_v9, 5  ;;  %v186_v24 = vrot.slane %v184_v10, 4  ;;  %v189_v25 = vrot.slane %v187_v11, 5  ;;  %v4322_v11 = vld [vmem:[%s5359_s0 + $0x60] sm:$0xf] }
  0x2e   :  { %2270 = vmatprep.mubr.bf16.mxu1 %v3086_v28  ;;  %3553 = vmatprep.subr.bf16.mxu0 %v3823_v29  ;;  %v175_v16 = vrot.slane %v173_v6, 5  ;;  %v413_v27 = vshrl.u32 %v4255_v7, 16  ;;  %v195_v29 = vrot.slane %v193_v17, 5  ;;  %v416_v30 = vshll.u32 %v4255_v7, 16 }
  0x2f   :  { %3617 = vmatprep.subr.bf16.mxu1 %v3825_v52  ;;  %v172_v15 = vrot.slane %v170_v4, 4  ;;  %2173 = vmatprep.mubr.bf16.mxu0 %v3054_v8  ;;  %v190_v36 = vor.u32 %v189_v25, %v186_v24  ;;  %v3062_v41 = vrot.slane %v4235_v60, 9  ;;  %v254_v46 = vrot.slane %v51_v61, 5  ;;  %v3832_v52 = vld [vmem:[%s5358_s1 + $0x1a0] sm:$0xff]   ;;  %v4303_v61 = vld [vmem:[%s5359_s0 + $0x58] sm:$0xf] }
  0x30   :  { %3554 = vmatpush3.bf16.msra.mxu0 %v3824_v40  ;;  %v3063_v48 = vrot.slane %v4243_v0, 9  ;;  %v258_v50 = vrot.slane %v53_v3, 5  ;;  %v3051_v54 = vcombine.low %v4235_v60, %v4243_v0  ;;  %v4315_v4 = vld [vmem:[%s5359_s0 + $0x58] sm:$0xf]  ;;  %v817_v8 = vshll.u32 %v3141_v58, 16 }
  0x31   :  { %3618 = vmatpush3.bf16.msra.mxu1 %v3826_v55  ;;  %3555 = vmatprep.subr.bf16.mxu0 %v3829_v13  ;;  %v176_v28 = vor.u32 %v175_v16, %v172_v15  ;;  %v191_v51 = vrot.slane %v190_v36, 4  ;;  %v255_v55 = vsel %vm4076_vm5, %v3062_v41, %v254_v46  ;;  %v822_v9 = vshrl.u32 %v4303_v61, 16  ;;  %v3835_v13 = vld [vmem:[%s5358_s1 + $0x168] sm:$0xff]  }
  0x32   :  { %3619 = vmatprep.subr.bf16.mxu1 %v3831_v33  ;;  %v259_v56 = vsel %vm4076_vm5, %v3063_v48, %v258_v50  ;;  %v825_v10 = vshll.u32 %v4303_v61, 16  ;;  %v831_v17 = vshll.u32 %v3143_v1, 16 }
  0x33   :  { %v177_v42 = vrot.slane %v176_v28, 4  ;;  %v196_v60 = vsel %vm4065_vm4, %v191_v51, %v195_v29  ;;  %v3067_v0 = vcombine.low %v255_v55, %v259_v56  ;;  %v824_v24 = vrot.slane %v822_v9, 4  ;;  %v3838_v56 = vld [vmem:[%s5358_s1 + $0x1a8] sm:$0xff]  }
  0x34   :  { %2271 = vmatmul.mubr.bf16.gmra.mrb[8].mxu1 %v3066_v2  ;;  %3556 = vmatpush3.bf16.msra.mxu0 %v3830_v19  ;;  %v3836_v19 = vld [vmem:[%s5358_s1 + $0x128] sm:$0xff]   ;;  %v827_v25 = vrot.slane %v825_v10, 5  ;;  %v833_v33 = vrot.slane %v831_v17, 5 }
  0x35   :  { %2174 = vmatmul.mubr.bf16.gmra.mrb[8].mxu0 %v3050_v57  ;;  %2278 = vmatprep.mubr.bf16.mxu1 %v3087_v18  ;;  %v182_v53 = vsel %vm4065_vm4, %v177_v42, %v181_v21  ;;  %v4295_v57 = vld [vmem:[%s5359_s0 + $0x50] sm:$0xf]  ;;  %v3192_v18 = vcombine.low %v4315_v4, %v4322_v11  ;;  %v819_v21 = vrot.slane %v817_v8, 5  ;;  %v3837_v42 = vld [vmem:[%s5358_s1 + $0x1e8] sm:$0xff]  }
  0x36   :  { %v808_v2 = vshrl.u32 %v4295_v57, 16  ;;  %v811_v3 = vshll.u32 %v4295_v57, 16  ;;  %3620 = vmatpush3.bf16.msra.mxu1 %v3832_v52  ;;  %v3055_v6 = vcombine.low %v182_v53, %v196_v60  ;;  %3557 = vmatprep.subr.bf16.mxu0 %v3835_v13  ;;  %v828_v46 = vor.u32 %v827_v25, %v824_v24  ;;  %v3147_v8 = vld [vmem:[%s5359_s0 + $0x6c] sm:$0x1]  ;;  %v4375_v13 = vld [vmem:[%s5359_s0 + $0x68] sm:$0xf] }
  0x37   :  { %v3164_v50 = vrot.slane %v4295_v57, 9  ;;  %v949_v52 = vrot.slane %v3141_v58, 5  ;;  %v3165_v53 = vrot.slane %v4303_v61, 9  ;;  %3621 = vmatprep.subr.bf16.mxu1 %v3837_v42  ;;  %v3842_v42 = vld [vmem:[%s5358_s1 + $0x130] sm:$0xff]  }
  0x38   :  { %v810_v15 = vrot.slane %v808_v2, 4  ;;  %v813_v16 = vrot.slane %v811_v3, 5  ;;  %2181 = vmatprep.mubr.bf16.mxu0 %v3055_v6  ;;  %3558 = vmatpush3.bf16.msra.mxu0 %v3836_v19  ;;  %v829_v55 = vrot.slane %v828_v46, 4  ;;  %v3145_v3 = vld [vmem:[%s5359_s0 + $0x64] sm:$0x1] }
  0x39   :  { %v950_v2 = vsel %vm4076_vm5, %v3164_v50, %v949_v52  ;;  %v4363_v6 = vld [vmem:[%s5359_s0 + $0x68] sm:$0xf]  ;;  %v4382_v19 = vld [vmem:[%s5359_s0 + $0x70] sm:$0xf] }
  0x3a   :  { %v814_v29 = vor.u32 %v813_v16, %v810_v15  ;;  %3622 = vmatpush3.bf16.msra.mxu1 %v3838_v56  ;;  %v845_v16 = vshll.u32 %v3145_v3, 16  ;;  %v850_v17 = vshrl.u32 %v4363_v6, 16 }
  0x3c   :  { %2279 = vmatmul.mubr.bf16.gmra.mrb[12].mxu1 %v3067_v0  ;;  %v815_v51 = vrot.slane %v814_v29, 4  ;;  %v3156_v0 = vcombine.low %v4295_v57, %v4303_v61  ;;  %v834_v57 = vsel %vm4065_vm4, %v829_v55, %v833_v33  ;;  %v859_v29 = vshll.u32 %v3147_v8, 16 }
  0x3d   :  { %2182 = vmatmul.mubr.bf16.gmra.mrb[12].mxu0 %v3051_v54  ;;  %2286 = vmatprep.mubr.bf16.mxu1 %v3192_v18  ;;  %v953_v54 = vrot.slane %v3143_v1, 5  ;;  %v4355_v1 = vld [vmem:[%s5359_s0 + $0x60] sm:$0xf]  ;;  %v853_v18 = vshll.u32 %v4363_v6, 16  ;;  %v3193_v33 = vcombine.low %v4375_v13, %v4382_v19  ;;  %v847_v46 = vrot.slane %v845_v16, 5  ;;  %v3844_v16 = vld [vmem:[%s5358_s1 + $0x1b0] sm:$0xff]  }
  0x3e   :  { %v820_v60 = vsel %vm4065_vm4, %v815_v51, %v819_v21  ;;  %v836_v9 = vshrl.u32 %v4355_v1, 16  ;;  %v839_v10 = vshll.u32 %v4355_v1, 16  ;;  %v3841_v21 = vld [vmem:[%s5358_s1 + $0x170] sm:$0xff]   ;;  %v852_v50 = vrot.slane %v850_v17, 4 }
  0x3f   :  { %v954_v58 = vsel %vm4076_vm5, %v3165_v53, %v953_v54  ;;  %v3160_v15 = vcombine.low %v820_v60, %v834_v57  ;;  %v855_v51 = vrot.slane %v853_v18, 5  ;;  %3559 = vmatprep.subr.bf16.mxu0 %v3841_v21  ;;  %v861_v54 = vrot.slane %v859_v29, 5  ;;  %v3843_v60 = vld [vmem:[%s5358_s1 + $0x1f0] sm:$0xff]   ;;  %v3151_v29 = vld [vmem:[%s5359_s0 + $0x7c] sm:$0x1] }
  0x40   :  { %v3172_v61 = vcombine.low %v950_v2, %v954_v58  ;;  %v838_v24 = vrot.slane %v836_v9, 4  ;;  %v841_v25 = vrot.slane %v839_v10, 5  ;;  %v3166_v57 = vrot.slane %v4355_v1, 9  ;;  %3560 = vmatpush3.bf16.msra.mxu0 %v3842_v42  ;;  %3623 = vmatprep.subr.bf16.mxu1 %v3843_v60  ;;  %v4442_v60 = vld [vmem:[%s5359_s0 + $0x80] sm:$0xf] }
  0x41   :  { %2189 = vmatprep.mubr.bf16.mxu0 %v3160_v15  ;;  %v856_v2 = vor.u32 %v855_v51, %v852_v50  ;;  %v957_v9 = vrot.slane %v3145_v3, 5  ;;  %v961_v10 = vrot.slane %v3147_v8, 5  ;;  %v3157_v18 = vcombine.low %v4355_v1, %v4363_v6  ;;  %v4415_v8 = vld [vmem:[%s5359_s0 + $0x70] sm:$0xf]  ;;  %3624 = vmatpush3.bf16.msra.mxu1 %v3844_v16 }
  0x42   :  { %v842_v53 = vor.u32 %v841_v25, %v838_v24  ;;  %v3149_v24 = vld [vmem:[%s5359_s0 + $0x74] sm:$0x1]  ;;  %v4423_v25 = vld [vmem:[%s5359_s0 + $0x78] sm:$0xf]  ;;  %v867_v42 = vshll.u32 %v4415_v8, 16 }
  0x43   :  { %v857_v15 = vrot.slane %v856_v2, 4  ;;  %v958_v21 = vsel %vm4076_vm5, %v3166_v57, %v957_v9  ;;  %v873_v51 = vshll.u32 %v3149_v24, 16  ;;  %v3847_v2 = vld [vmem:[%s5358_s1 + $0x178] sm:$0xff]   ;;  %v887_v9 = vshll.u32 %v3151_v29, 16 }
  0x44   :  { %2287 = vmatmul.mubr.bf16.gmra.mrb[16].mxu1 %v3172_v61  ;;  %v843_v61 = vrot.slane %v842_v53, 4  ;;  %v878_v53 = vshrl.u32 %v4423_v25, 16  ;;  %3561 = vmatprep.subr.bf16.mxu0 %v3847_v2  ;;  %v969_v2 = vrot.slane %v3151_v29, 5  ;;  %v3153_v29 = vld [vmem:[%s5359_s0 + $0x84] sm:$0x1] }
  0x45   :  { %2190 = vmatmul.mubr.bf16.gmra.mrb[16].mxu0 %v3156_v0  ;;  %2294 = vmatprep.mubr.bf16.mxu1 %v3193_v33  ;;  %v3167_v0 = vrot.slane %v4363_v6, 9  ;;  %v862_v1 = vsel %vm4065_vm4, %v857_v15, %v861_v54  ;;  %v864_v33 = vshrl.u32 %v4415_v8, 16  ;;  %v881_v54 = vshll.u32 %v4423_v25, 16 }
  0x46   :  { %v848_v17 = vsel %vm4065_vm4, %v843_v61, %v847_v46  ;;  %v4435_v46 = vld [vmem:[%s5359_s0 + $0x78] sm:$0xf]  ;;  %v869_v61 = vrot.slane %v867_v42, 5  ;;  %v875_v15 = vrot.slane %v873_v51, 5  ;;  %v880_v16 = vrot.slane %v878_v53, 4 }
  0x47   :  { %v962_v3 = vsel %vm4076_vm5, %v3167_v0, %v961_v10  ;;  %v3161_v50 = vcombine.low %v848_v17, %v862_v1  ;;  %v866_v57 = vrot.slane %v864_v33, 4  ;;  %v3194_v0 = vcombine.low %v4435_v46, %v4442_v60  ;;  %v3848_v10 = vld [vmem:[%s5358_s1 + $0x138] sm:$0xff]  }
  0x48   :  { %v3173_v6 = vcombine.low %v958_v21, %v962_v3  ;;  %v883_v17 = vrot.slane %v881_v54, 5  ;;  %v889_v1 = vrot.slane %v887_v9, 5  ;;  %v3849_v42 = vld [vmem:[%s5358_s1 + $0x1f8] sm:$0xff]   ;;  %v3168_v51 = vrot.slane %v4415_v8, 9  ;;  %3562 = vmatpush3.bf16.msra.mxu0 %v3848_v10 }
  0x49   :  { %2197 = vmatprep.mubr.bf16.mxu0 %v3161_v50  ;;  %v870_v3 = vor.u32 %v869_v61, %v866_v57  ;;  %v965_v54 = vrot.slane %v3149_v24, 5  ;;  %3625 = vmatprep.subr.bf16.mxu1 %v3849_v42  ;;  %v3850_v61 = vld [vmem:[%s5358_s1 + $0x1b8] sm:$0xff]   ;;  %v4495_v42 = vld [vmem:[%s5359_s0 + $0x88] sm:$0xf] }
  0x4a   :  { %v884_v58 = vor.u32 %v883_v17, %v880_v16  ;;  %v3155_v16 = vld [vmem:[%s5359_s0 + $0x8c] sm:$0x1]  ;;  %3626 = vmatpush3.bf16.msra.mxu1 %v3850_v61 }
  0x4b   :  { %v871_v53 = vrot.slane %v870_v3, 4  ;;  %v966_v10 = vsel %vm4076_vm5, %v3168_v51, %v965_v54  ;;  %v915_v61 = vshll.u32 %v3155_v16, 16 }
  0x4c   :  { %2295 = vmatmul.mubr.bf16.gmra.mrb[20].mxu1 %v3173_v6  ;;  %v885_v57 = vrot.slane %v884_v58, 4  ;;  %v4475_v58 = vld [vmem:[%s5359_s0 + $0x80] sm:$0xf]  ;;  %v977_v6 = vrot.slane %v3155_v16, 5  ;;  %v4542_v16 = vld [vmem:[%s5359_s0 + $0x10] sm:$0xf] }
  0x4d   :  { %2198 = vmatmul.mubr.bf16.gmra.mrb[20].mxu0 %v3157_v18  ;;  %2302 = vmatprep.mubr.bf16.mxu1 %v3194_v0  ;;  %v3169_v18 = vrot.slane %v4423_v25, 9  ;;  %v876_v9 = vsel %vm4065_vm4, %v871_v53, %v875_v15  ;;  %v3158_v0 = vcombine.low %v4415_v8, %v4423_v25  ;;  %v4483_v15 = vld [vmem:[%s5359_s0 + $0x88] sm:$0xf]  ;;  %v892_v17 = vshrl.u32 %v4475_v58, 16 }
  0x4e   :  { %v890_v8 = vsel %vm4065_vm4, %v885_v57, %v889_v1  ;;  %v895_v3 = vshll.u32 %v4475_v58, 16  ;;  %v901_v53 = vshll.u32 %v3153_v29, 16  ;;  %v906_v54 = vshrl.u32 %v4483_v15, 16 }
  0x4f   :  { %v970_v24 = vsel %vm4076_vm5, %v3169_v18, %v969_v2  ;;  %v3162_v51 = vcombine.low %v876_v9, %v890_v8  ;;  %v909_v1 = vshll.u32 %v4483_v15, 16  ;;  %v4502_v18 = vld [vmem:[%s5359_s0 + $0x90] sm:$0xf]  ;;  %v4507_v2 = vld [vmem:[%s5358_s1 + $0x200] sm:$0xff]   ;;  %v894_v57 = vrot.slane %v892_v17, 4 }
  0x50   :  { %v3174_v25 = vcombine.low %v966_v10, %v970_v24  ;;  %v897_v10 = vrot.slane %v895_v3, 5  ;;  %v3195_v9 = vcombine.low %v4495_v42, %v4502_v18  ;;  %v4514_v24 = vld [vmem:[%s5360_s5] sm:$0xff]   ;;  %v903_v8 = vrot.slane %v901_v53, 5  ;;  %3707 = vmatprep.subr.bf16.mxu0 %v4507_v2 }
  0x51   :  { %2205 = vmatprep.mubr.bf16.mxu0 %v3162_v51  ;;  %v908_v50 = vrot.slane %v906_v54, 4  ;;  %v911_v33 = vrot.slane %v909_v1, 5  ;;  %v917_v17 = vrot.slane %v915_v61, 5  ;;  %v3170_v51 = vrot.slane %v4475_v58, 9  ;;  %3739 = vmatprep.subr.bf16.mxu1 %v4514_v24 }
  0x52   :  { %v973_v54 = vrot.slane %v3153_v29, 5  ;;  %v3171_v1 = vrot.slane %v4483_v15, 9  ;;  %v3069_v29 = vld [vmem:[%s5359_s0 + $0xc] sm:$0x1] }
  0x53   :  { %v912_v56 = vor.u32 %v911_v33, %v908_v50  ;;  %v3159_v33 = vcombine.low %v4475_v58, %v4483_v15 }
  0x54   :  { %2303 = vmatmul.mubr.bf16.gmra.mrb[24].mxu1 %v3174_v25  ;;  %v898_v25 = vor.u32 %v897_v10, %v894_v57  ;;  %v3094_v57 = vrot.slane %v4121_v26, 9  ;;  %v974_v50 = vsel %vm4076_vm5, %v3170_v51, %v973_v54  ;;  %v978_v61 = vsel %vm4076_vm5, %v3171_v1, %v977_v6  ;;  %v4549_v6 = vld [vmem:[%s5359_s0 + $0x14] sm:$0x1]  ;;  %v4661_v26 = vld [vmem:[%s5359_s0 + $0x30] sm:$0xf] }
  0x55   :  { %2206 = vmatmul.mubr.bf16.gmra.mrb[24].mxu0 %v3158_v0  ;;  %2310 = vmatprep.mubr.bf16.mxu1 %v3195_v9  ;;  %v913_v0 = vrot.slane %v912_v56, 4  ;;  %v3071_v56 = vld [vmem:[%s5359_s0 + $0x14] sm:$0x1]  ;;  %v3175_v15 = vcombine.low %v974_v50, %v978_v61  ;;  %v338_v9 = vshll.u32 %v3069_v29, 16  ;;  %v569_v1 = vshrl.u32 %v4542_v16, 16 }
  0x56   :  { %v899_v53 = vrot.slane %v898_v25, 4  ;;  %v4554_v25 = vld [vmem:[%s5359_s0 + $0x18] sm:$0xf]  ;;  %v474_v54 = vrot.slane %v3071_v56, 5  ;;  %v572_v61 = vshll.u32 %v4542_v16, 16  ;;  %v578_v55 = vshll.u32 %v4549_v6, 16 }
  0x57   :  { %v918_v58 = vsel %vm4065_vm4, %v913_v0, %v917_v17  ;;  %v4559_v17 = vld [vmem:[%s5359_s0 + $0x1c] sm:$0x1]  ;;  %v340_v0 = vrot.slane %v338_v9, 5  ;;  %v586_v21 = vshll.u32 %v4554_v25, 16 }
  0x58   :  { %v904_v10 = vsel %vm4065_vm4, %v899_v53, %v903_v8  ;;  %v352_v8 = vshll.u32 %v3071_v56, 16  ;;  %v470_v53 = vrot.slane %v3069_v29, 5  ;;  %v475_v29 = vsel %vm4076_vm5, %v3093_v63, %v474_v54  ;;  %v3073_v63 = vld [vmem:[%s5359_s0 + $0x1c] sm:$0x1] }
  0x59   :  { %v3163_v51 = vcombine.low %v904_v10, %v918_v58  ;;  %v571_v56 = vrot.slane %v569_v1, 4  ;;  %v583_v58 = vshrl.u32 %v4554_v25, 16  ;;  %v574_v9 = vrot.slane %v572_v61, 5  ;;  %v4599_v1 = vld [vmem:[%s5359_s0 + $0x24] sm:$0x1] }
  0x5a   :  { %v354_v50 = vrot.slane %v352_v8, 5  ;;  %v471_v10 = vsel %vm4076_vm5, %v3092_v62, %v470_v53  ;;  %v580_v8 = vrot.slane %v578_v55, 5  ;;  %v592_v44 = vshll.u32 %v4559_v17, 16  ;;  %v4587_v55 = vld [vmem:[%s5359_s0 + $0x24] sm:$0x1] }
  0x5b   :  { %2213 = vmatprep.mubr.bf16.mxu0 %v3163_v51  ;;  %v585_v51 = vrot.slane %v583_v58, 4  ;;  %v341_v62 = vsel %vm4065_vm4, %v4111_v22, %v340_v0  ;;  %v588_v53 = vrot.slane %v586_v21, 5  ;;  %v3120_v22 = vcombine.low %v4542_v16, %v4554_v25  ;;  %v4611_v58 = vld [vmem:[%s5359_s0 + $0x2c] sm:$0x1] }
  0x5c   :  { %2311 = vmatmul.mubr.bf16.gmra.mrb[28].mxu1 %v3175_v15  ;;  %v3100_v15 = vcombine.low %v471_v10, %v475_v29  ;;  %v355_v49 = vsel %vm4065_vm4, %v4113_v23, %v354_v50  ;;  %v4594_v23 = vld [vmem:[%s5359_s0 + $0x20] sm:$0xf]  ;;  %v594_v0 = vrot.slane %v592_v44, 5  ;;  %v478_v50 = vrot.slane %v3073_v63, 5  ;;  %v4606_v10 = vld [vmem:[%s5359_s0 + $0x28] sm:$0xf] }
  0x5d   :  { %2214 = vmatmul.mubr.bf16.gmra.mrb[28].mxu0 %v3159_v33  ;;  %v575_v33 = vor.u32 %v574_v9, %v571_v56  ;;  %v3088_v54 = vcombine.low %v341_v62, %v355_v49  ;;  %v3095_v61 = vrot.slane %v4129_v31, 9  ;;  %v482_v21 = vrot.slane %v4587_v55, 5  ;;  %v3855_v44 = vld [vmem:[%s5358_s1 + $0x208] sm:$0xff]   ;;  %v3859_v31 = vld [vmem:[%s5360_s5 + $0x10] sm:$0xff]  }
  0x5e   :  { %2351 = vmatprep.mubr.bf16.mxu0 %v3100_v15  ;;  %v589_v56 = vor.u32 %v588_v53, %v585_v51  ;;  %v597_v15 = vshrl.u32 %v4594_v23, 16  ;;  %v600_v9 = vshll.u32 %v4594_v23, 16  ;;  %v479_v62 = vsel %vm4076_vm5, %v3094_v57, %v478_v50 }
  0x5f   :  { %v576_v29 = vrot.slane %v575_v33, 4  ;;  %v483_v49 = vsel %vm4076_vm5, %v3095_v61, %v482_v21  ;;  %v606_v51 = vshll.u32 %v4599_v1, 16  ;;  %v611_v33 = vshrl.u32 %v4606_v10, 16 }
  0x60   :  { %v590_v3 = vrot.slane %v589_v56, 4  ;;  %v3101_v52 = vcombine.low %v479_v62, %v483_v49  ;;  %v599_v48 = vrot.slane %v597_v15, 4  ;;  %v602_v41 = vrot.slane %v600_v9, 5 }
  0x61   :  { %v581_v53 = vsel %vm4065_vm4, %v576_v29, %v580_v8  ;;  %v608_v36 = vrot.slane %v606_v51, 5  ;;  %v613_v28 = vrot.slane %v611_v33, 4  ;;  %v614_v40 = vshll.u32 %v4606_v10, 16 }
  0x62   :  { %v595_v57 = vsel %vm4065_vm4, %v590_v3, %v594_v0  ;;  %v620_v50 = vshll.u32 %v4611_v58, 16  ;;  %v718_v61 = vrot.slane %v4599_v1, 5  ;;  %v603_v8 = vor.u32 %v602_v41, %v599_v48  ;;  %v3856_v3 = vld [vmem:[%s5360_s5 + $0x8] sm:$0xff]   ;;  %v3858_v0 = vld [vmem:[%s5358_s1 + $0x210] sm:$0xff]  }
  0x63   :  { %v3124_v32 = vcombine.low %v581_v53, %v595_v57  ;;  %v616_v29 = vrot.slane %v614_v40, 5  ;;  %v359_v56 = vrot.slane %v357_v35, 4  ;;  %v362_v40 = vrot.slane %v360_v43, 5  ;;  %v4653_v48 = vld [vmem:[%s5359_s0 + $0x34] sm:$0x1] }
  0x64   :  { %v366_v41 = vshll.u32 %v3073_v63, 16  ;;  %v373_v35 = vrot.slane %v371_v45, 4  ;;  %v376_v9 = vrot.slane %v374_v47, 5  ;;  %v380_v62 = vshll.u32 %v4587_v55, 16  ;;  %v4678_v57 = vld [vmem:[%s5359_s0 + $0x34] sm:$0x1] }
  0x65   :  { %2352 = vmatmul.mubr.bf16.vlgmr.msra.gmra.mrb[32].mxu0 %v3088_v54  ;;  %v4641_v54 = vld [vmem:[%s5359_s0 + $0x2c] sm:$0x1]  ;;  %2448 = vmatprep.mubr.bf16.mxu1 %v3124_v32  ;;  %v617_v15 = vor.u32 %v616_v29, %v613_v28  ;;  %v363_v43 = vor.u32 %v362_v40, %v359_v56  ;;  %v3121_v63 = vcombine.low %v4594_v23, %v4606_v10  ;;  %v3096_v32 = vrot.slane %v4189_v14, 9  ;;  %v3861_v29 = vld [vmem:[%s5358_s1 + $0x218] sm:$0xff]  }
  0x66   :  { %3708 = vmatpush3.bf16.msra.mxu0 %v4507_v2  ;;  %2359 = vmatprep.mubr.bf16.mxu0 %v3101_v52  ;;  %v622_v2 = vrot.slane %v620_v50, 5  ;;  %v604_v52 = vrot.slane %v603_v8, 4  ;;  %v368_v45 = vrot.slane %v366_v41, 5  ;;  %v377_v55 = vor.u32 %v376_v9, %v373_v35  ;;  %v4701_v35 = vld [vmem:[%s5359_s0 + $0x3c] sm:$0x1] }
  0x67   :  { %3709 = vmatprep.subr.bf16.mxu0 %v3855_v44  ;;  %2449 = vmatmul.mubr.bf16.vlgmr.msra.gmra.mrb[32].mxu1 %v3120_v22  ;;  %v618_v28 = vrot.slane %v617_v15, 4  ;;  %v382_v49 = vrot.slane %v380_v62, 5  ;;  %v364_v22 = vrot.slane %v363_v43, 4  ;;  %v486_v51 = vrot.slane %v4641_v54, 5 }
  0x68   :  { %3740 = vmatpush3.bf16.msra.mxu1 %v4514_v24  ;;  %v609_v47 = vsel %vm4065_vm4, %v604_v52, %v608_v36  ;;  %v3097_v33 = vrot.slane %v4199_v20, 9  ;;  %v490_v53 = vrot.slane %v4653_v48, 5  ;;  %v378_v24 = vrot.slane %v377_v55, 4 }
  0x69   :  { %3741 = vmatprep.subr.bf16.mxu1 %v3856_v3  ;;  %v623_v36 = vsel %vm4065_vm4, %v618_v28, %v622_v2  ;;  %v625_v50 = vshrl.u32 %v4661_v26, 16  ;;  %v628_v8 = vshll.u32 %v4661_v26, 16  ;;  %v369_v40 = vsel %vm4065_vm4, %v364_v22, %v368_v45  ;;  %v3862_v28 = vld [vmem:[%s5360_s5 + $0x18] sm:$0xff]  }
  0x6a   :  { %3710 = vmatpush3.bf16.msra.mxu0 %v3855_v44  ;;  %v4685_v44 = vld [vmem:[%s5359_s0 + $0x38] sm:$0xf]  ;;  %v3125_v56 = vcombine.low %v609_v47, %v623_v36  ;;  %v487_v2 = vsel %vm4076_vm5, %v3096_v32, %v486_v51  ;;  %v491_v41 = vsel %vm4076_vm5, %v3097_v33, %v490_v53  ;;  %v383_v52 = vsel %vm4065_vm4, %v378_v24, %v382_v49  ;;  %v4719_v22 = vld [vmem:[%s5359_s0 + $0x3c] sm:$0x1]  ;;  %v3864_v51 = vld [vmem:[%s5358_s1 + $0x220] sm:$0xff]  }
  0x6b   :  { %3711 = vmatprep.subr.bf16.mxu0 %v3858_v0  ;;  %v3102_v15 = vcombine.low %v487_v2, %v491_v41  ;;  %v627_v9 = vrot.slane %v625_v50, 4  ;;  %v630_v62 = vrot.slane %v628_v8, 5  ;;  %v3089_v43 = vcombine.low %v369_v40, %v383_v52  ;;  %v4730_v8 = vld [vmem:[%s5359_s0 + $0x44] sm:$0x1]  ;;  %v4738_v2 = vld [vmem:[%s5359_s0 + $0x40] sm:$0xf] }
  0x6c   :  { %3742 = vmatpush3.bf16.msra.mxu1 %v3856_v3  ;;  %2456 = vmatprep.mubr.bf16.mxu1 %v3125_v56  ;;  %v634_v45 = vshll.u32 %v4678_v57, 16  ;;  %v639_v32 = vshrl.u32 %v4685_v44, 16  ;;  %v642_v47 = vshll.u32 %v4685_v44, 16  ;;  %v648_v3 = vshll.u32 %v4701_v35, 16 }
  0x6d   :  { %3743 = vmatprep.subr.bf16.mxu1 %v3859_v31  ;;  %v631_v55 = vor.u32 %v630_v62, %v627_v9  ;;  %v387_v49 = vrot.slane %v385_v34, 4  ;;  %2360 = vmatmul.mubr.bf16.gmra.mrb[36].mxu0 %v3089_v43  ;;  %v394_v34 = vshll.u32 %v4641_v54, 16  ;;  %v401_v50 = vrot.slane %v399_v38, 4  ;;  %v3865_v38 = vld [vmem:[%s5360_s5 + $0x20] sm:$0xff]   ;;  %v4760_v43 = vld [vmem:[%s5359_s0 + $0x48] sm:$0xf] }
  0x6e   :  { %3712 = vmatpush3.bf16.msra.mxu0 %v3858_v0  ;;  %v390_v0 = vrot.slane %v388_v37, 5  ;;  %v636_v33 = vrot.slane %v634_v45, 5  ;;  %v641_v53 = vrot.slane %v639_v32, 4  ;;  %v644_v36 = vrot.slane %v642_v47, 5  ;;  %2367 = vmatprep.mubr.bf16.mxu0 %v3102_v15 }
  0x6f   :  { %3713 = vmatprep.subr.bf16.mxu0 %v3861_v29  ;;  %2457 = vmatmul.mubr.bf16.gmra.mrb[36].mxu1 %v3121_v63  ;;  %v632_v14 = vrot.slane %v631_v55, 4  ;;  %v650_v37 = vrot.slane %v648_v3, 5  ;;  %v396_v63 = vrot.slane %v394_v34, 5  ;;  %v404_v40 = vrot.slane %v402_v39, 5  ;;  %v4769_v55 = vld [vmem:[%s5359_s0 + $0x4c] sm:$0x1] }
  0x70   :  { %v391_v24 = vor.u32 %v390_v0, %v387_v49  ;;  %3744 = vmatpush3.bf16.msra.mxu1 %v3859_v31  ;;  %v645_v56 = vor.u32 %v644_v36, %v641_v53  ;;  %v408_v54 = vshll.u32 %v4653_v48, 16  ;;  %v3122_v20 = vcombine.low %v4661_v26, %v4685_v44  ;;  %v4751_v48 = vld [vmem:[%s5359_s0 + $0x44] sm:$0x1]  ;;  %v3868_v49 = vld [vmem:[%s5360_s5 + $0x28] sm:$0xff]  }
  0x71   :  { %3745 = vmatprep.subr.bf16.mxu1 %v3862_v28  ;;  %v637_v31 = vsel %vm4065_vm4, %v632_v14, %v636_v33  ;;  %v3098_v39 = vrot.slane %v4255_v7, 9  ;;  %v405_v15 = vor.u32 %v404_v40, %v401_v50  ;;  %v494_v62 = vrot.slane %v4719_v22, 5 }
  0x72   :  { %3714 = vmatpush3.bf16.msra.mxu0 %v3861_v29  ;;  %v392_v41 = vrot.slane %v391_v24, 4  ;;  %v3867_v29 = vld [vmem:[%s5358_s1 + $0x228] sm:$0xff]   ;;  %v646_v52 = vrot.slane %v645_v56, 4  ;;  %v410_v9 = vrot.slane %v408_v54, 5  ;;  %v3099_v32 = vrot.slane %v4262_v12, 9 }
  0x73   :  { %3715 = vmatprep.subr.bf16.mxu0 %v3864_v51  ;;  %v498_v47 = vrot.slane %v4730_v8, 5  ;;  %v653_v3 = vshrl.u32 %v4738_v2, 16  ;;  %v406_v33 = vrot.slane %v405_v15, 4  ;;  %v495_v53 = vsel %vm4076_vm5, %v3098_v39, %v494_v62  ;;  %v4798_v62 = vld [vmem:[%s5359_s0 + $0x5c] sm:$0x1] }
  0x74   :  { %v397_v45 = vsel %vm4065_vm4, %v392_v41, %v396_v63  ;;  %3746 = vmatpush3.bf16.msra.mxu1 %v3862_v28  ;;  %v651_v0 = vsel %vm4065_vm4, %v646_v52, %v650_v37  ;;  %v656_v36 = vshll.u32 %v4738_v2, 16  ;;  %v662_v24 = vshll.u32 %v4751_v48, 16 }
  0x75   :  { %3747 = vmatprep.subr.bf16.mxu1 %v3865_v38  ;;  %v3126_v34 = vcombine.low %v637_v31, %v651_v0  ;;  %v499_v14 = vsel %vm4076_vm5, %v3099_v32, %v498_v47  ;;  %v655_v28 = vrot.slane %v653_v3, 4  ;;  %v411_v50 = vsel %vm4065_vm4, %v406_v33, %v410_v9  ;;  %v4814_v47 = vld [vmem:[%s5359_s0 + $0x60] sm:$0xf] }
  0x76   :  { %3716 = vmatpush3.bf16.msra.mxu0 %v3864_v51  ;;  %v3103_v37 = vcombine.low %v495_v53, %v499_v14  ;;  %v658_v56 = vrot.slane %v656_v36, 5  ;;  %v667_v63 = vshrl.u32 %v4760_v43, 16  ;;  %v3870_v51 = vld [vmem:[%s5358_s1 + $0x230] sm:$0xff]   ;;  %v3090_v40 = vcombine.low %v397_v45, %v411_v50  ;;  %v4803_v45 = vld [vmem:[%s5359_s0 + $0x64] sm:$0x1] }
  0x77   :  { %3717 = vmatprep.subr.bf16.mxu0 %v3867_v29  ;;  %2464 = vmatprep.mubr.bf16.mxu1 %v3126_v34  ;;  %v664_v54 = vrot.slane %v662_v24, 5  ;;  %v670_v31 = vshll.u32 %v4760_v43, 16  ;;  %v676_v41 = vshll.u32 %v4769_v55, 16  ;;  %v415_v15 = vrot.slane %v413_v27, 4  ;;  %v4825_v36 = vld [vmem:[%s5359_s0 + $0x64] sm:$0x1] }
  0x78   :  { %3748 = vmatpush3.bf16.msra.mxu1 %v3865_v38  ;;  %v659_v39 = vor.u32 %v658_v56, %v655_v28  ;;  %v669_v52 = vrot.slane %v667_v63, 4  ;;  %v418_v9 = vrot.slane %v416_v30, 5  ;;  %v3871_v38 = vld [vmem:[%s5360_s5 + $0x30] sm:$0xff]   ;;  %2368 = vmatmul.mubr.bf16.gmra.mrb[40].mxu0 %v3090_v40  ;;  %v422_v7 = vshll.u32 %v4719_v22, 16  ;;  %v3874_v34 = vld [vmem:[%s5360_s5 + $0x38] sm:$0xff]  }
  0x79   :  { %2465 = vmatmul.mubr.bf16.gmra.mrb[40].mxu1 %v3122_v20  ;;  %v672_v27 = vrot.slane %v670_v31, 5  ;;  %v678_v20 = vrot.slane %v676_v41, 5  ;;  %v5371_v30 = vshrl.u32 %v4262_v12, 16  ;;  %3749 = vmatprep.subr.bf16.mxu1 %v3868_v49  ;;  %v5372_v33 = vshll.u32 %v4262_v12, 16 }
  0x7a   :  { %3718 = vmatpush3.bf16.msra.mxu0 %v3867_v29  ;;  %v3873_v29 = vld [vmem:[%s5358_s1 + $0x238] sm:$0xff]   ;;  %2375 = vmatprep.mubr.bf16.mxu0 %v3103_v37  ;;  %v660_v3 = vrot.slane %v659_v39, 4  ;;  %v419_v0 = vor.u32 %v418_v9, %v415_v15  ;;  %v436_v22 = vshll.u32 %v4730_v8, 16  ;;  %v424_v28 = vrot.slane %v422_v7, 5  ;;  %v4856_v7 = vld [vmem:[%s5359_s0 + $0x6c] sm:$0x1] }
  0x7b   :  { %v429_v32 = vrot.slane %v5371_v30, 4  ;;  %v432_v53 = vrot.slane %v5372_v33, 5  ;;  %3719 = vmatprep.subr.bf16.mxu0 %v3870_v51  ;;  %v673_v14 = vor.u32 %v672_v27, %v669_v52  ;;  %v3123_v24 = vcombine.low %v4738_v2, %v4760_v43 }
  0x7c   :  { %v3200_v12 = vrot.slane %v4315_v4, 9  ;;  %3750 = vmatpush3.bf16.msra.mxu1 %v3868_v49  ;;  %v665_v8 = vsel %vm4065_vm4, %v660_v3, %v664_v54  ;;  %v420_v50 = vrot.slane %v419_v0, 4  ;;  %v438_v56 = vrot.slane %v436_v22, 5  ;;  %v4843_v54 = vld [vmem:[%s5359_s0 + $0x68] sm:$0xf] }
  0x7d   :  { %v433_v37 = vor.u32 %v432_v53, %v429_v32  ;;  %3751 = vmatprep.subr.bf16.mxu1 %v3871_v38  ;;  %v674_v63 = vrot.slane %v673_v14, 4  ;;  %v1188_v40 = vrot.slane %v4798_v62, 5  ;;  %v3201_v31 = vrot.slane %v4322_v11, 9 }
  0x7e   :  { %3720 = vmatpush3.bf16.msra.mxu0 %v3870_v51  ;;  %v1192_v41 = vrot.slane %v4803_v45, 5  ;;  %v425_v39 = vsel %vm4065_vm4, %v420_v50, %v424_v28  ;;  %v1286_v51 = vshrl.u32 %v4814_v47, 16  ;;  %v1289_v52 = vshll.u32 %v4814_v47, 16 }
  0x7f   :  { %3721 = vmatprep.subr.bf16.mxu0 %v3873_v29  ;;  %v434_v49 = vrot.slane %v433_v37, 4  ;;  %v679_v15 = vsel %vm4065_vm4, %v674_v63, %v678_v20  ;;  %v1189_v9 = vsel %vm4076_vm5, %v3200_v12, %v1188_v40  ;;  %v1295_v30 = vshll.u32 %v4825_v36, 16 }
  0x80   :  { %v1193_v27 = vsel %vm4076_vm5, %v3201_v31, %v1192_v41  ;;  %3752 = vmatpush3.bf16.msra.mxu1 %v3871_v38  ;;  %v3127_v32 = vcombine.low %v665_v8, %v679_v15  ;;  %v1288_v20 = vrot.slane %v1286_v51, 4  ;;  %v1291_v53 = vrot.slane %v1289_v52, 5 }
  0x81   :  { %v439_v3 = vsel %vm4065_vm4, %v434_v49, %v438_v56  ;;  %v3208_v0 = vcombine.low %v1189_v9, %v1193_v27  ;;  %3753 = vmatprep.subr.bf16.mxu1 %v3874_v34  ;;  %v1297_v22 = vrot.slane %v1295_v30, 5  ;;  %v1300_v14 = vshrl.u32 %v4843_v54, 16 }
  0x82   :  { %3722 = vmatpush3.bf16.msra.mxu0 %v3873_v29  ;;  %v3091_v33 = vcombine.low %v425_v39, %v439_v3  ;;  %2472 = vmatprep.mubr.bf16.mxu1 %v3127_v32  ;;  %v1303_v28 = vshll.u32 %v4843_v54, 16  ;;  %v1309_v12 = vshll.u32 %v4856_v7, 16  ;;  %v5373_v38 = vshrl.u32 %v4315_v4, 16  ;;  %v4871_v29 = vld [vmem:[%s5359_s0 + $0x6c] sm:$0x1] }
  0x83   :  { %v5374_v50 = vshll.u32 %v4315_v4, 16  ;;  %2473 = vmatmul.mubr.bf16.gmra.mrb[44].mxu1 %v3123_v24  ;;  %v1292_v56 = vor.u32 %v1291_v53, %v1288_v20  ;;  %v1302_v63 = vrot.slane %v1300_v14, 4  ;;  %v1056_v40 = vshll.u32 %v4798_v62, 16  ;;  %v3183_v62 = vld [vmem:[%s5359_s0 + $0x74] sm:$0x1] }
  0x84   :  { %v1049_v8 = vrot.slane %v5373_v38, 4  ;;  %2376 = vmatmul.mubr.bf16.gmra.mrb[44].mxu0 %v3091_v33  ;;  %v5375_v31 = vshrl.u32 %v4322_v11, 16  ;;  %v1305_v39 = vrot.slane %v1303_v28, 5  ;;  %v1311_v49 = vrot.slane %v1309_v12, 5  ;;  %3754 = vmatpush3.bf16.msra.mxu1 %v3874_v34  ;;  %v4902_v14 = vld [vmem:[%s5359_s0 + $0x78] sm:$0xf] }
  0x85   :  { %v1052_v37 = vrot.slane %v5374_v50, 5  ;;  %2383 = vmatprep.mubr.bf16.mxu0 %v3208_v0  ;;  %v5376_v4 = vshll.u32 %v4322_v11, 16  ;;  %v1293_v15 = vrot.slane %v1292_v56, 4  ;;  %v1058_v9 = vrot.slane %v1056_v40, 5  ;;  %v4888_v11 = vld [vmem:[%s5359_s0 + $0x70] sm:$0xf] }
  0x86   :  { %v1063_v41 = vrot.slane %v5375_v31, 4  ;;  %v1070_v27 = vshll.u32 %v4803_v45, 16  ;;  %v3228_v24 = vcombine.low %v4814_v47, %v4843_v54  ;;  %v1306_v30 = vor.u32 %v1305_v39, %v1302_v63  ;;  %v4893_v45 = vld [vmem:[%s5359_s0 + $0x74] sm:$0x1] }
  0x87   :  { %v1053_v51 = vor.u32 %v1052_v37, %v1049_v8  ;;  %v1066_v52 = vrot.slane %v5376_v4, 5  ;;  %v3202_v0 = vrot.slane %v4375_v13, 9  ;;  %v1298_v34 = vsel %vm4065_vm4, %v1293_v15, %v1297_v22  ;;  %v4911_v22 = vld [vmem:[%s5359_s0 + $0x7c] sm:$0x1] }
  0x88   :  { %v1072_v20 = vrot.slane %v1070_v27, 5  ;;  %v1196_v33 = vrot.slane %v4871_v29, 5  ;;  %v3203_v53 = vrot.slane %v4382_v19, 9  ;;  %v1307_v28 = vrot.slane %v1306_v30, 4 }
  0x89   :  { %v1054_v32 = vrot.slane %v1053_v51, 4  ;;  %v1067_v3 = vor.u32 %v1066_v52, %v1063_v41  ;;  %v1200_v8 = vrot.slane %v3183_v62, 5  ;;  %v1314_v37 = vshrl.u32 %v4888_v11, 16 }
  0x8a   :  { %v1197_v50 = vsel %vm4076_vm5, %v3202_v0, %v1196_v33  ;;  %v1317_v56 = vshll.u32 %v4888_v11, 16  ;;  %v1323_v63 = vshll.u32 %v4893_v45, 16  ;;  %v1312_v40 = vsel %vm4065_vm4, %v1307_v28, %v1311_v49  ;;  %v4927_v49 = vld [vmem:[%s5359_s0 + $0x7c] sm:$0x1] }
  0x8b   :  { %v1059_v12 = vsel %vm4065_vm4, %v1054_v32, %v1058_v9  ;;  %v1068_v38 = vrot.slane %v1067_v3, 4  ;;  %v1201_v41 = vsel %vm4076_vm5, %v3203_v53, %v1200_v8  ;;  %v1328_v39 = vshrl.u32 %v4902_v14, 16 }
  0x8c   :  { %v3232_v51 = vcombine.low %v1298_v34, %v1312_v40  ;;  %v3209_v52 = vcombine.low %v1197_v50, %v1201_v41  ;;  %v1316_v15 = vrot.slane %v1314_v37, 4  ;;  %v1319_v9 = vrot.slane %v1317_v56, 5  ;;  %v4942_v56 = vld [vmem:[%s5359_s0 + $0x84] sm:$0x1] }
  0x8d   :  { %v1073_v31 = vsel %vm4065_vm4, %v1068_v38, %v1072_v20  ;;  %v1325_v27 = vrot.slane %v1323_v63, 5  ;;  %v1330_v30 = vrot.slane %v1328_v39, 4  ;;  %v1331_v32 = vshll.u32 %v4902_v14, 16 }
  0x8e   :  { %v3196_v4 = vcombine.low %v1059_v12, %v1073_v31  ;;  %2480 = vmatprep.mubr.bf16.mxu1 %v3232_v51  ;;  %v1337_v3 = vshll.u32 %v4911_v22, 16  ;;  %v5377_v0 = vshrl.u32 %v4375_v13, 16  ;;  %v5378_v20 = vshll.u32 %v4375_v13, 16  ;;  %v4947_v13 = vld [vmem:[%s5359_s0 + $0x80] sm:$0xf] }
  0x8f   :  { %v1084_v53 = vshll.u32 %v4871_v29, 16  ;;  %2481 = vmatmul.mubr.bf16.gmra.mrb[48].mxu1 %v3228_v24  ;;  %v1320_v28 = vor.u32 %v1319_v9, %v1316_v15  ;;  %v1333_v12 = vrot.slane %v1331_v32, 5  ;;  %v5379_v38 = vshrl.u32 %v4382_v19, 16  ;;  %v4952_v31 = vld [vmem:[%s5359_s0 + $0x84] sm:$0x1] }
  0x90   :  { %2384 = vmatmul.mubr.bf16.gmra.mrb[48].mxu0 %v3196_v4  ;;  %v1077_v34 = vrot.slane %v5377_v0, 4  ;;  %v1080_v33 = vrot.slane %v5378_v20, 5  ;;  %v5380_v50 = vshll.u32 %v4382_v19, 16  ;;  %v1339_v29 = vrot.slane %v1337_v3, 5 }
  0x91   :  { %2391 = vmatprep.mubr.bf16.mxu0 %v3209_v52  ;;  %v1091_v8 = vrot.slane %v5379_v38, 4  ;;  %v1086_v63 = vrot.slane %v1084_v53, 5  ;;  %v1098_v40 = vshll.u32 %v3183_v62, 16  ;;  %v1321_v19 = vrot.slane %v1320_v28, 4  ;;  %v4961_v62 = vld [vmem:[%s5359_s0 + $0x88] sm:$0xf] }
  0x92   :  { %v1094_v37 = vrot.slane %v5380_v50, 5  ;;  %v1081_v24 = vor.u32 %v1080_v33, %v1077_v34  ;;  %v1334_v41 = vor.u32 %v1333_v12, %v1330_v30  ;;  %v3229_v51 = vcombine.low %v4888_v11, %v4902_v14  ;;  %v4969_v34 = vld [vmem:[%s5359_s0 + $0x8c] sm:$0x1] }
  0x93   :  { %v1100_v52 = vrot.slane %v1098_v40, 5  ;;  %v3204_v15 = vrot.slane %v4435_v46, 9  ;;  %v1204_v9 = vrot.slane %v4927_v49, 5  ;;  %v1326_v32 = vsel %vm4065_vm4, %v1321_v19, %v1325_v27 }
  0x94   :  { %v1095_v39 = vor.u32 %v1094_v37, %v1091_v8  ;;  %v1082_v4 = vrot.slane %v1081_v24, 4  ;;  %v1335_v3 = vrot.slane %v1334_v41, 4  ;;  %v3205_v0 = vrot.slane %v4442_v60, 9 }
  0x95   :  { %v1205_v33 = vsel %vm4076_vm5, %v3204_v15, %v1204_v9  ;;  %v1208_v53 = vrot.slane %v4942_v56, 5  ;;  %v1342_v28 = vshrl.u32 %v4947_v13, 16  ;;  %v1345_v38 = vshll.u32 %v4947_v13, 16 }
  0x96   :  { %v1096_v30 = vrot.slane %v1095_v39, 4  ;;  %v1087_v20 = vsel %vm4065_vm4, %v1082_v4, %v1086_v63  ;;  %v1340_v27 = vsel %vm4065_vm4, %v1335_v3, %v1339_v29  ;;  %v1351_v8 = vshll.u32 %v4952_v31, 16 }
  0x97   :  { %v3233_v50 = vcombine.low %v1326_v32, %v1340_v27  ;;  %v1209_v24 = vsel %vm4076_vm5, %v3205_v0, %v1208_v53  ;;  %v1344_v63 = vrot.slane %v1342_v28, 4  ;;  %v1347_v19 = vrot.slane %v1345_v38, 5 }
  0x98   :  { %v1101_v12 = vsel %vm4065_vm4, %v1096_v30, %v1100_v52  ;;  %v3210_v40 = vcombine.low %v1205_v33, %v1209_v24  ;;  %v1353_v41 = vrot.slane %v1351_v8, 5  ;;  %v1356_v39 = vshrl.u32 %v4961_v62, 16 }
  0x99   :  { %v3197_v37 = vcombine.low %v1087_v20, %v1101_v12  ;;  %2488 = vmatprep.mubr.bf16.mxu1 %v3233_v50  ;;  %v1359_v29 = vshll.u32 %v4961_v62, 16  ;;  %v1365_v4 = vshll.u32 %v4969_v34, 16  ;;  %v5381_v52 = vshrl.u32 %v4435_v46, 16 }
  0x9a   :  { %v5382_v9 = vshll.u32 %v4435_v46, 16  ;;  %2489 = vmatmul.mubr.bf16.gmra.mrb[52].mxu1 %v3229_v51  ;;  %v1348_v3 = vor.u32 %v1347_v19, %v1344_v63  ;;  %v1358_v30 = vrot.slane %v1356_v39, 4  ;;  %v1112_v0 = vshll.u32 %v4927_v49, 16  ;;  %v3189_v46 = vld [vmem:[%s5359_s0 + $0x8c] sm:$0x1] }
  0x9b   :  { %2392 = vmatmul.mubr.bf16.gmra.mrb[52].mxu0 %v3197_v37  ;;  %v1105_v15 = vrot.slane %v5381_v52, 4  ;;  %v5383_v20 = vshrl.u32 %v4442_v60, 16  ;;  %v1361_v53 = vrot.slane %v1359_v29, 5  ;;  %v1367_v28 = vrot.slane %v1365_v4, 5  ;;  %v3191_v37 = vld [vmem:[%s5359_s0 + $0x94] sm:$0x1] }
  0x9c   :  { %v1108_v32 = vrot.slane %v5382_v9, 5  ;;  %2399 = vmatprep.mubr.bf16.mxu0 %v3210_v40  ;;  %v5384_v12 = vshll.u32 %v4442_v60, 16  ;;  %v1349_v8 = vrot.slane %v1348_v3, 4  ;;  %v1114_v51 = vrot.slane %v1112_v0, 5  ;;  %v5010_v19 = vld [vmem:[%s5359_s0 + $0x90] sm:$0xf] }
  0x9d   :  { %v1119_v33 = vrot.slane %v5383_v20, 4  ;;  %v1126_v50 = vshll.u32 %v4942_v56, 16  ;;  %v3230_v49 = vcombine.low %v4947_v13, %v4961_v62  ;;  %v1362_v24 = vor.u32 %v1361_v53, %v1358_v30  ;;  %v5015_v56 = vld [vmem:[%s5359_s0 + $0x94] sm:$0x1] }
  0x9e   :  { %v1109_v27 = vor.u32 %v1108_v32, %v1105_v15  ;;  %v1122_v38 = vrot.slane %v5384_v12, 5  ;;  %v3206_v60 = vrot.slane %v4495_v42, 9  ;;  %v1354_v39 = vsel %vm4065_vm4, %v1349_v8, %v1353_v41  ;;  %v5023_v15 = vld [vmem:[%s5359_s0 + $0x98] sm:$0xf] }
  0x9f   :  { %v1128_v29 = vrot.slane %v1126_v50, 5  ;;  %v1212_v4 = vrot.slane %v3189_v46, 5  ;;  %v3207_v52 = vrot.slane %v4502_v18, 9  ;;  %v1363_v9 = vrot.slane %v1362_v24, 4 }
  0xa0   :  { %v1110_v63 = vrot.slane %v1109_v27, 4  ;;  %v1123_v40 = vor.u32 %v1122_v38, %v1119_v33  ;;  %v1216_v30 = vrot.slane %v3191_v37, 5  ;;  %v1370_v41 = vshrl.u32 %v5010_v19, 16  ;;  %v5041_v38 = vld [vmem:[%s5359_s0 + $0x9c] sm:$0x1] }
  0xa1   :  { %v1213_v0 = vsel %vm4076_vm5, %v3206_v60, %v1212_v4  ;;  %v1373_v20 = vshll.u32 %v5010_v19, 16  ;;  %v1379_v33 = vshll.u32 %v5015_v56, 16  ;;  %v1368_v53 = vsel %vm4065_vm4, %v1363_v9, %v1367_v28 }
  0xa2   :  { %v1115_v32 = vsel %vm4065_vm4, %v1110_v63, %v1114_v51  ;;  %v1124_v3 = vrot.slane %v1123_v40, 4  ;;  %v1217_v12 = vsel %vm4076_vm5, %v3207_v52, %v1216_v30  ;;  %v1384_v8 = vshrl.u32 %v5023_v15, 16 }
  0xa3   :  { %v3234_v51 = vcombine.low %v1354_v39, %v1368_v53  ;;  %v3211_v24 = vcombine.low %v1213_v0, %v1217_v12  ;;  %v1372_v63 = vrot.slane %v1370_v41, 4  ;;  %v1375_v40 = vrot.slane %v1373_v20, 5 }
  0xa4   :  { %v1129_v27 = vsel %vm4065_vm4, %v1124_v3, %v1128_v29  ;;  %v1381_v60 = vrot.slane %v1379_v33, 5  ;;  %v1386_v28 = vrot.slane %v1384_v8, 4  ;;  %v1387_v4 = vshll.u32 %v5023_v15, 16 }
  0xa5   :  { %v3198_v50 = vcombine.low %v1115_v32, %v1129_v27  ;;  %2496 = vmatprep.mubr.bf16.mxu1 %v3234_v51  ;;  %v1393_v29 = vshll.u32 %v5041_v38, 16  ;;  %v5385_v52 = vshrl.u32 %v4495_v42, 16  ;;  %v5386_v3 = vshll.u32 %v4495_v42, 16 }
  0xa6   :  { %v1140_v21 = vshll.u32 %v3189_v46, 16  ;;  %2497 = vmatmul.mubr.bf16.gmra.mrb[56].mxu1 %v3230_v49  ;;  %v1376_v39 = vor.u32 %v1375_v40, %v1372_v63  ;;  %v1389_v32 = vrot.slane %v1387_v4, 5  ;;  %v5387_v0 = vshrl.u32 %v4502_v18, 16 }
  0xa7   :  { %2400 = vmatmul.mubr.bf16.gmra.mrb[56].mxu0 %v3198_v50  ;;  %v1133_v9 = vrot.slane %v5385_v52, 4  ;;  %v1136_v30 = vrot.slane %v5386_v3, 5  ;;  %v5388_v20 = vshll.u32 %v4502_v18, 16  ;;  %v1395_v53 = vrot.slane %v1393_v29, 5 }
  0xa8   :  { %2407 = vmatprep.mubr.bf16.mxu0 %v3211_v24  ;;  %v1147_v41 = vrot.slane %v5387_v0, 4  ;;  %v1142_v12 = vrot.slane %v1140_v21, 5  ;;  %v1154_v8 = vshll.u32 %v3191_v37, 16  ;;  %v1377_v51 = vrot.slane %v1376_v39, 4 }
  0xa9   :  { %v1150_v33 = vrot.slane %v5388_v20, 5  ;;  %v1137_v27 = vor.u32 %v1136_v30, %v1133_v9  ;;  %v1390_v50 = vor.u32 %v1389_v32, %v1386_v28  ;;  %v3231_v42 = vcombine.low %v5010_v19, %v5023_v15 }
  0xaa   :  { %v1156_v49 = vrot.slane %v1154_v8, 5  ;;  %v3128_v24 = vrot.slane %v4542_v16, 9  ;;  %v710_v63 = vrot.slane %v4549_v6, 5  ;;  %v1382_v18 = vsel %vm4065_vm4, %v1377_v51, %v1381_v60 }
  0xab   :  { %v1151_v52 = vor.u32 %v1150_v33, %v1147_v41  ;;  %v1138_v46 = vrot.slane %v1137_v27, 4  ;;  %v1391_v40 = vrot.slane %v1390_v50, 4  ;;  %v3129_v21 = vrot.slane %v4554_v25, 9  ;;  %v3876_v27 = vld [vmem:[%s5361_s4 + $0x8] sm:$0xff]  }
  0xac   :  { %v711_v28 = vsel %vm4076_vm5, %v3128_v24, %v710_v63  ;;  %v714_v29 = vrot.slane %v4559_v17, 5  ;;  %v3130_v9 = vrot.slane %v4594_v23, 9  ;;  %v3131_v60 = vrot.slane %v4606_v10, 9  ;;  %v3875_v17 = vld [vmem:[%s5361_s4] sm:$0xff]  }
  0xad   :  { %v1152_v4 = vrot.slane %v1151_v52, 4  ;;  %v1143_v37 = vsel %vm4065_vm4, %v1138_v46, %v1142_v12  ;;  %v1396_v16 = vsel %vm4065_vm4, %v1391_v40, %v1395_v53  ;;  %v3132_v25 = vrot.slane %v4661_v26, 9 }
  0xae   :  { %v3235_v3 = vcombine.low %v1382_v18, %v1396_v16  ;;  %v715_v39 = vsel %vm4076_vm5, %v3129_v21, %v714_v29  ;;  %v719_v23 = vsel %vm4076_vm5, %v3130_v9, %v718_v61  ;;  %v5389_v32 = vrot.slane %v4611_v58, 5 }
  0xaf   :  { %v1157_v6 = vsel %vm4065_vm4, %v1152_v4, %v1156_v49  ;;  %v3136_v59 = vcombine.low %v711_v28, %v715_v39  ;;  %v726_v26 = vrot.slane %v4678_v57, 5  ;;  %v3133_v0 = vrot.slane %v4685_v44, 9  ;;  %v3879_v49 = vld [vmem:[%s5361_s4 + $0x20] sm:$0xff]   ;;  %v3881_v28 = vld [vmem:[%s5361_s4 + $0x30] sm:$0xff]  }
  0xb0   :  { %v3199_v30 = vcombine.low %v1143_v37, %v1157_v6  ;;  %v723_v10 = vsel %vm4076_vm5, %v3131_v60, %v5389_v32  ;;  %2504 = vmatprep.mubr.bf16.mxu1 %v3235_v3  ;;  %v730_v20 = vrot.slane %v4701_v35, 5  ;;  %v3134_v1 = vrot.slane %v4738_v2, 9 }
  0xb1   :  { %v3137_v41 = vcombine.low %v719_v23, %v723_v10  ;;  %v734_v33 = vrot.slane %v4751_v48, 5  ;;  %2505 = vmatmul.mubr.bf16.gmra.mrb[60].mxu1 %v3231_v42  ;;  %v727_v58 = vsel %vm4076_vm5, %v3132_v25, %v726_v26  ;;  %v3135_v61 = vrot.slane %v4760_v43, 9  ;;  %v3877_v43 = vld [vmem:[%s5361_s4 + $0x10] sm:$0xff]  }
  0xb2   :  { %2408 = vmatmul.mubr.bf16.gmra.mrb[60].mxu0 %v3199_v30  ;;  %v738_v57 = vrot.slane %v4769_v55, 5  ;;  %3755 = vmatprep.mubr.bf16.mxu1 %v3875_v17  ;;  %v731_v44 = vsel %vm4076_vm5, %v3133_v0, %v730_v20  ;;  %v3236_v55 = vrot.slane %v4814_v47, 9  ;;  %v1427_v12 = vrot.slane %v4825_v36, 5  ;;  %v3878_v47 = vld [vmem:[%s5361_s4 + $0x18] sm:$0xff]  }
  0xb3   :  { %3723 = vmatprep.mubr.bf16.mxu0 %v3136_v59  ;;  %v735_v35 = vsel %vm4076_vm5, %v3134_v1, %v734_v33  ;;  %v3138_v53 = vcombine.low %v727_v58, %v731_v44  ;;  %v3237_v8 = vrot.slane %v4843_v54, 9  ;;  %v1431_v51 = vrot.slane %v4856_v7, 5 }
  0xb4   :  { %v739_v2 = vsel %vm4076_vm5, %v3135_v61, %v738_v57  ;;  %v1428_v50 = vsel %vm4076_vm5, %v3236_v55, %v1427_v12  ;;  %v3238_v42 = vrot.slane %v4888_v11, 9  ;;  %v1435_v54 = vrot.slane %v4893_v45, 5 }
  0xb5   :  { %v3139_v48 = vcombine.low %v735_v35, %v739_v2  ;;  %v1432_v52 = vsel %vm4076_vm5, %v3237_v8, %v1431_v51  ;;  %v3239_v7 = vrot.slane %v4902_v14, 9  ;;  %v1439_v46 = vrot.slane %v4911_v22, 5 }
  0xb6   :  { %v3244_v36 = vcombine.low %v1428_v50, %v1432_v52  ;;  %v3240_v24 = vrot.slane %v4947_v13, 9  ;;  %v1443_v63 = vrot.slane %v4952_v31, 5  ;;  %v3241_v11 = vrot.slane %v4961_v62, 9 }
  0xb7   :  { %v1447_v18 = vrot.slane %v4969_v34, 5  ;;  %v1436_v45 = vsel %vm4076_vm5, %v3238_v42, %v1435_v54  ;;  %v1440_v14 = vsel %vm4076_vm5, %v3239_v7, %v1439_v46  ;;  %v3242_v62 = vrot.slane %v5010_v19, 9  ;;  %v3880_v34 = vld [vmem:[%s5361_s4 + $0x28] sm:$0xff]  }
  0xb8   :  { %v1444_v22 = vsel %vm4076_vm5, %v3240_v24, %v1443_v63  ;;  %v3245_v31 = vcombine.low %v1436_v45, %v1440_v14  ;;  %v1451_v4 = vrot.slane %v5015_v56, 5  ;;  %v3243_v21 = vrot.slane %v5023_v15, 9  ;;  %v3882_v56 = vld [vmem:[%s5361_s4 + $0x38] sm:$0xff]  }
  0xb9   :  { %3756 = vmatmul.mubr.bf16.vlgmr.msra.gmra.mrb[64].mxu1 %v3876_v27  ;;  %v1448_v13 = vsel %vm4076_vm5, %v3241_v11, %v1447_v18  ;;  %v1455_v37 = vrot.slane %v5041_v38, 5 }
  0xba   :  { %3724 = vmatmul.mubr.bf16.vlgmr.msra.gmra.mrb[64].mxu0 %v3137_v41  ;;  %3759 = vmatprep.mubr.bf16.mxu1 %v3877_v43  ;;  %v3246_v40 = vcombine.low %v1444_v22, %v1448_v13  ;;  %v1452_v19 = vsel %vm4076_vm5, %v3242_v62, %v1451_v4 }
  0xbb   :  { %3727 = vmatprep.mubr.bf16.mxu0 %v3138_v53  ;;  %v1456_v29 = vsel %vm4076_vm5, %v3243_v21, %v1455_v37 }
  0xbc   :  { %v3247_v9 = vcombine.low %v1452_v19, %v1456_v29 }
  0xc1   :  { %3760 = vmatmul.mubr.bf16.gmra.mrb[68].mxu1 %v3878_v47 }
  0xc2   :  { %3728 = vmatmul.mubr.bf16.gmra.mrb[68].mxu0 %v3139_v48  ;;  %3763 = vmatprep.mubr.bf16.mxu1 %v3879_v49 }
  0xc3   :  { %3731 = vmatprep.mubr.bf16.mxu0 %v3244_v36 }
  0xc9   :  { %3764 = vmatmul.mubr.bf16.gmra.mrb[72].mxu1 %v3880_v34 }
  0xca   :  { %3732 = vmatmul.mubr.bf16.gmra.mrb[72].mxu0 %v3245_v31  ;;  %3767 = vmatprep.mubr.bf16.mxu1 %v3881_v28 }
  0xcb   :  { %3735 = vmatprep.mubr.bf16.mxu0 %v3246_v40 }
  0xd1   :  { %3768 = vmatmul.mubr.bf16.gmra.mrb[76].mxu1 %v3882_v56 }
  0xd2   :  { %3736 = vmatmul.mubr.bf16.gmra.mrb[76].mxu0 %v3247_v9 }
  0xf6   :  { %v3435_v38 = vpop.f32.mrb[0].mxu0 }
  0xf7   :  { %v3499_v15 = vpop.f32.mrb[0].mxu1  ;;  %v3436_v6 = vpop.f32.mrb[1].mxu0 }
  0xf8   :  { %v3500_v16 = vpop.f32.mrb[1].mxu1  ;;  %v3437_v3 = vadd.f32 %v3436_v6, %v3435_v38  ;;  %v3438_v30 = vpop.f32.mrb[2].mxu0 }
  0xf9   :  { %v3501_v60 = vadd.f32 %v3500_v16, %v3499_v15  ;;  %v3502_v25 = vpop.f32.mrb[2].mxu1  ;;  %v3439_v17 = vpop.f32.mrb[3].mxu0 }
  0xfa   :  { %v3503_v39 = vpop.f32.mrb[3].mxu1  ;;  %v3440_v59 = vadd.f32 %v3439_v17, %v3438_v30 }
  0xfb   :  { %v3504_v5 = vadd.f32 %v3503_v39, %v3502_v25  ;;  %v5154_v23 = vadd.f32 %v3501_v60, %v3437_v3 }
  0xfd   :  { %v5156_v32 = vadd.f32 %v3504_v5, %v3440_v59 }
  0xff   :  { %v3505_v10 = vpop.f32.mrb[4].mxu1 }
 0x100   :  { %v3506_v26 = vpop.f32.mrb[5].mxu1  ;;  %v3441_v20 = vpop.f32.mrb[4].mxu0 }
 0x101   :  { %v3507_v0 = vadd.f32 %v3506_v26, %v3505_v10  ;;  %v3508_v41 = vpop.f32.mrb[6].mxu1  ;;  %v3442_v33 = vpop.f32.mrb[5].mxu0 }
 0x102   :  { %v3509_v1 = vpop.f32.mrb[7].mxu1  ;;  %v3443_v61 = vadd.f32 %v3442_v33, %v3441_v20  ;;  %v3444_v57 = vpop.f32.mrb[6].mxu0 }
 0x103   :  { %v3510_v58 = vadd.f32 %v3509_v1, %v3508_v41  ;;  %v3445_v44 = vpop.f32.mrb[7].mxu0 }
 0x104   :  { %v5158_v35 = vadd.f32 %v3507_v0, %v3443_v61  ;;  %v3446_v53 = vadd.f32 %v3445_v44, %v3444_v57 }
 0x106   :  { %v5160_v2 = vadd.f32 %v3510_v58, %v3446_v53 }
 0x107   :  { %v3511_v48 = vpop.f32.mrb[8].mxu1 }
 0x108   :  { %v3512_v27 = vpop.f32.mrb[9].mxu1  ;;  %v3447_v43 = vpop.f32.mrb[8].mxu0 }
 0x109   :  { %v3513_v55 = vadd.f32 %v3512_v27, %v3511_v48  ;;  %v3514_v12 = vpop.f32.mrb[10].mxu1  ;;  %v3448_v8 = vpop.f32.mrb[9].mxu0 }
 0x10a   :  { %v3515_v51 = vpop.f32.mrb[11].mxu1  ;;  %v3449_v50 = vadd.f32 %v3448_v8, %v3447_v43  ;;  %v3450_v52 = vpop.f32.mrb[10].mxu0 }
 0x10b   :  { %v3516_v42 = vadd.f32 %v3515_v51, %v3514_v12  ;;  %v3451_v47 = vpop.f32.mrb[11].mxu0 }
 0x10c   :  { %v5162_v36 = vadd.f32 %v3513_v55, %v3449_v50  ;;  %v3452_v54 = vadd.f32 %v3451_v47, %v3450_v52 }
 0x10e   :  { %v5164_v7 = vadd.f32 %v3516_v42, %v3452_v54 }
 0x10f   :  { %v3517_v46 = vpop.f32.mrb[12].mxu1 }
 0x110   :  { %v3518_v49 = vpop.f32.mrb[13].mxu1  ;;  %v3453_v24 = vpop.f32.mrb[12].mxu0 }
 0x111   :  { %v3519_v63 = vadd.f32 %v3518_v49, %v3517_v46  ;;  %v3520_v11 = vpop.f32.mrb[14].mxu1  ;;  %v3454_v18 = vpop.f32.mrb[13].mxu0 }
 0x112   :  { %v3521_v45 = vpop.f32.mrb[15].mxu1  ;;  %v3455_v14 = vadd.f32 %v3454_v18, %v3453_v24  ;;  %v3456_v22 = vpop.f32.mrb[14].mxu0 }
 0x113   :  { %v3522_v13 = vadd.f32 %v3521_v45, %v3520_v11  ;;  %v3457_v31 = vpop.f32.mrb[15].mxu0 }
 0x114   :  { %v5166_v62 = vadd.f32 %v3519_v63, %v3455_v14  ;;  %v3458_v34 = vadd.f32 %v3457_v31, %v3456_v22 }
 0x116   :  { %v5168_v40 = vadd.f32 %v3522_v13, %v3458_v34 }
 0x117   :  { %v3523_v4 = vpop.f32.mrb[16].mxu1 }
 0x118   :  { %v3524_v21 = vpop.f32.mrb[17].mxu1  ;;  %v3459_v37 = vpop.f32.mrb[16].mxu0 }
 0x119   :  { %v3525_v28 = vadd.f32 %v3524_v21, %v3523_v4  ;;  %v3526_v19 = vpop.f32.mrb[18].mxu1  ;;  %v3460_v29 = vpop.f32.mrb[17].mxu0 }
 0x11a   :  { %v3527_v9 = vpop.f32.mrb[19].mxu1  ;;  %v3461_v56 = vadd.f32 %v3460_v29, %v3459_v37  ;;  %v3462_v15 = vpop.f32.mrb[18].mxu0 }
 0x11b   :  { %v3528_v38 = vadd.f32 %v3527_v9, %v3526_v19  ;;  %v3463_v16 = vpop.f32.mrb[19].mxu0 }
 0x11c   :  { %v5170_v6 = vadd.f32 %v3525_v28, %v3461_v56  ;;  %v3464_v60 = vadd.f32 %v3463_v16, %v3462_v15 }
 0x11e   :  { %v5172_v25 = vadd.f32 %v3528_v38, %v3464_v60 }
 0x11f   :  { %v3529_v3 = vpop.f32.mrb[20].mxu1 }
 0x120   :  { %v3530_v30 = vpop.f32.mrb[21].mxu1  ;;  %v3465_v39 = vpop.f32.mrb[20].mxu0 }
 0x121   :  { %v3531_v17 = vadd.f32 %v3530_v30, %v3529_v3  ;;  %v3532_v5 = vpop.f32.mrb[22].mxu1  ;;  %v3466_v59 = vpop.f32.mrb[21].mxu0 }
 0x122   :  { %v3533_v10 = vpop.f32.mrb[23].mxu1  ;;  %v3467_v26 = vadd.f32 %v3466_v59, %v3465_v39  ;;  %v3468_v0 = vpop.f32.mrb[22].mxu0 }
 0x123   :  { %v3534_v41 = vadd.f32 %v3533_v10, %v3532_v5  ;;  %v3469_v20 = vpop.f32.mrb[23].mxu0 }
 0x124   :  { %v5174_v1 = vadd.f32 %v3531_v17, %v3467_v26  ;;  %v3470_v33 = vadd.f32 %v3469_v20, %v3468_v0 }
 0x126   :  { %v5176_v58 = vadd.f32 %v3534_v41, %v3470_v33 }
 0x127   :  { %v3535_v61 = vpop.f32.mrb[24].mxu1 }
 0x128   :  { %v3536_v57 = vpop.f32.mrb[25].mxu1  ;;  %v3471_v44 = vpop.f32.mrb[24].mxu0 }
 0x129   :  { %v3537_v53 = vadd.f32 %v3536_v57, %v3535_v61  ;;  %v3538_v48 = vpop.f32.mrb[26].mxu1  ;;  %v3472_v27 = vpop.f32.mrb[25].mxu0 }
 0x12a   :  { %v3539_v43 = vpop.f32.mrb[27].mxu1  ;;  %v3473_v55 = vadd.f32 %v3472_v27, %v3471_v44  ;;  %v3474_v12 = vpop.f32.mrb[26].mxu0 }
 0x12b   :  { %v3540_v8 = vadd.f32 %v3539_v43, %v3538_v48  ;;  %v3475_v51 = vpop.f32.mrb[27].mxu0 }
 0x12c   :  { %v5178_v50 = vadd.f32 %v3537_v53, %v3473_v55  ;;  %v3476_v52 = vadd.f32 %v3475_v51, %v3474_v12 }
 0x12e   :  { %v5180_v42 = vadd.f32 %v3540_v8, %v3476_v52 }
 0x12f   :  { %v3541_v47 = vpop.f32.mrb[28].mxu1 }
 0x130   :  { %v3542_v54 = vpop.f32.mrb[29].mxu1  ;;  %v3477_v46 = vpop.f32.mrb[28].mxu0 }
 0x131   :  { %v3543_v49 = vadd.f32 %v3542_v54, %v3541_v47  ;;  %v3544_v24 = vpop.f32.mrb[30].mxu1  ;;  %v3478_v63 = vpop.f32.mrb[29].mxu0 }
 0x132   :  { %v3545_v11 = vpop.f32.mrb[31].mxu1  ;;  %v3479_v18 = vadd.f32 %v3478_v63, %v3477_v46  ;;  %v3480_v45 = vpop.f32.mrb[30].mxu0 }
 0x133   :  { %v3546_v14 = vadd.f32 %v3545_v11, %v3544_v24  ;;  %v3481_v22 = vpop.f32.mrb[31].mxu0 }
 0x134   :  { %v5182_v13 = vadd.f32 %v3543_v49, %v3479_v18  ;;  %v3482_v31 = vadd.f32 %v3481_v22, %v3480_v45 }
 0x136   :  { %v5184_v34 = vadd.f32 %v3546_v14, %v3482_v31 }
 0x138   :  { %v3563_v4 = vpop.f32.mrb[32].mxu0 }
 0x139   :  { %v3564_v21 = vpop.f32.mrb[33].mxu0 }
 0x13a   :  { %v3565_v37 = vadd.f32 %v3564_v21, %v3563_v4  ;;  %v3566_v28 = vpop.f32.mrb[34].mxu0  ;;  %v3627_v29 = vpop.f32.mrb[32].mxu1 }
 0x13b   :  { %v3567_v19 = vpop.f32.mrb[35].mxu0  ;;  %v3628_v15 = vpop.f32.mrb[33].mxu1 }
 0x13c   :  { %v2354_v9 = vadd.f32 %v3565_v37, %v5154_v23  ;;  %v3568_v56 = vadd.f32 %v3567_v19, %v3566_v28  ;;  %v3629_v38 = vadd.f32 %v3628_v15, %v3627_v29  ;;  %v3630_v16 = vpop.f32.mrb[34].mxu1 }
 0x13d   :  { %v3631_v3 = vpop.f32.mrb[35].mxu1 }
 0x13e   :  { %v2357_v60 = vadd.f32 %v3568_v56, %v5156_v32  ;;  %v3632_v30 = vadd.f32 %v3631_v3, %v3630_v16  ;;  %v5188_v39 = vadd.f32 %v3629_v38, %v2354_v9 }
 0x140   :  { %v5190_v17 = vadd.f32 %v3632_v30, %v2357_v60  ;;  %v3569_v5 = vpop.f32.mrb[36].mxu0 }
 0x141   :  { %v3570_v10 = vpop.f32.mrb[37].mxu0 }
 0x142   :  { %v3633_v59 = vpop.f32.mrb[36].mxu1  ;;  %v3571_v0 = vadd.f32 %v3570_v10, %v3569_v5  ;;  %v3572_v20 = vpop.f32.mrb[38].mxu0 }
 0x143   :  { %v3634_v26 = vpop.f32.mrb[37].mxu1  ;;  %v3573_v33 = vpop.f32.mrb[39].mxu0 }
 0x144   :  { %v3635_v41 = vadd.f32 %v3634_v26, %v3633_v59  ;;  %v3636_v23 = vpop.f32.mrb[38].mxu1  ;;  %v2362_v57 = vadd.f32 %v3571_v0, %v5158_v35  ;;  %v3574_v44 = vadd.f32 %v3573_v33, %v3572_v20 }
 0x145   :  { %v3637_v61 = vpop.f32.mrb[39].mxu1 }
 0x146   :  { %v3638_v32 = vadd.f32 %v3637_v61, %v3636_v23  ;;  %v2365_v53 = vadd.f32 %v3574_v44, %v5160_v2  ;;  %v5194_v48 = vadd.f32 %v3635_v41, %v2362_v57 }
 0x148   :  { %v5196_v27 = vadd.f32 %v3638_v32, %v2365_v53 }
 0x14b   :  { %v3575_v55 = vpop.f32.mrb[40].mxu0 }
 0x14c   :  { %v3639_v43 = vpop.f32.mrb[40].mxu1  ;;  %v3576_v8 = vpop.f32.mrb[41].mxu0 }
 0x14d   :  { %v3640_v12 = vpop.f32.mrb[41].mxu1  ;;  %v3577_v47 = vadd.f32 %v3576_v8, %v3575_v55  ;;  %v3578_v54 = vpop.f32.mrb[42].mxu0 }
 0x14e   :  { %v3641_v51 = vadd.f32 %v3640_v12, %v3639_v43  ;;  %v3642_v52 = vpop.f32.mrb[42].mxu1  ;;  %v3579_v49 = vpop.f32.mrb[43].mxu0 }
 0x14f   :  { %v3643_v46 = vpop.f32.mrb[43].mxu1  ;;  %v2370_v35 = vadd.f32 %v3577_v47, %v5162_v36  ;;  %v3580_v63 = vadd.f32 %v3579_v49, %v3578_v54 }
 0x150   :  { %v3644_v24 = vadd.f32 %v3643_v46, %v3642_v52 }
 0x151   :  { %v2373_v2 = vadd.f32 %v3580_v63, %v5164_v7  ;;  %v5200_v11 = vadd.f32 %v3641_v51, %v2370_v35 }
 0x153   :  { %v5202_v18 = vadd.f32 %v3644_v24, %v2373_v2 }
 0x156   :  { %v3645_v14 = vpop.f32.mrb[44].mxu1 }
 0x157   :  { %v3581_v45 = vpop.f32.mrb[44].mxu0  ;;  %v3646_v31 = vpop.f32.mrb[45].mxu1 }
 0x158   :  { %v3582_v22 = vpop.f32.mrb[45].mxu0  ;;  %v3647_v21 = vadd.f32 %v3646_v31, %v3645_v14  ;;  %v3648_v28 = vpop.f32.mrb[46].mxu1 }
 0x159   :  { %v3583_v4 = vadd.f32 %v3582_v22, %v3581_v45  ;;  %v3584_v37 = vpop.f32.mrb[46].mxu0  ;;  %v3649_v29 = vpop.f32.mrb[47].mxu1 }
 0x15a   :  { %v3585_v19 = vpop.f32.mrb[47].mxu0  ;;  %v3650_v56 = vadd.f32 %v3649_v29, %v3648_v28 }
 0x15b   :  { %v2378_v9 = vadd.f32 %v3583_v4, %v5166_v62  ;;  %v3586_v36 = vadd.f32 %v3585_v19, %v3584_v37 }
 0x15d   :  { %v2381_v7 = vadd.f32 %v3586_v36, %v5168_v40  ;;  %v5206_v15 = vadd.f32 %v3647_v21, %v2378_v9 }
 0x15f   :  { %v5208_v38 = vadd.f32 %v3650_v56, %v2381_v7 }
 0x162   :  { %v3651_v60 = vpop.f32.mrb[48].mxu1 }
 0x163   :  { %v3587_v16 = vpop.f32.mrb[48].mxu0  ;;  %v3652_v5 = vpop.f32.mrb[49].mxu1 }
 0x164   :  { %v3588_v3 = vpop.f32.mrb[49].mxu0  ;;  %v3653_v10 = vadd.f32 %v3652_v5, %v3651_v60  ;;  %v3654_v26 = vpop.f32.mrb[50].mxu1 }
 0x165   :  { %v3589_v30 = vadd.f32 %v3588_v3, %v3587_v16  ;;  %v3590_v59 = vpop.f32.mrb[50].mxu0  ;;  %v3655_v20 = vpop.f32.mrb[51].mxu1 }
 0x166   :  { %v3591_v0 = vpop.f32.mrb[51].mxu0  ;;  %v3656_v23 = vadd.f32 %v3655_v20, %v3654_v26  ;;  %v5240_v20 = vld [vmem:[%s5363_s2] ss:$0 sm:$0xff] }
 0x167   :  { %v2386_v41 = vadd.f32 %v3589_v30, %v5170_v6  ;;  %v3592_v62 = vadd.f32 %v3591_v0, %v3590_v59 }
 0x169   :  { %v2389_v40 = vadd.f32 %v3592_v62, %v5172_v25  ;;  %v5212_v33 = vadd.f32 %v3653_v10, %v2386_v41  ;;  %v5235_v41 = vld [vmem:[%s5362_s6] ss:$0 sm:$0xff] }
 0x16b   :  { %v5214_v61 = vadd.f32 %v3656_v23, %v2389_v40 }
 0x16d   :  { %v3657_v44 = vpop.f32.mrb[52].mxu1 }
 0x16e   :  { %v3593_v57 = vpop.f32.mrb[52].mxu0  ;;  %v3658_v43 = vpop.f32.mrb[53].mxu1 }
 0x16f   :  { %v3594_v32 = vpop.f32.mrb[53].mxu0  ;;  %v3659_v12 = vadd.f32 %v3658_v43, %v3657_v44  ;;  %v3660_v8 = vpop.f32.mrb[54].mxu1  ;;  %v5253_v44 = vld [vmem:[%s5365_s3] ss:$0 sm:$0xff] }
 0x170   :  { %v3595_v53 = vadd.f32 %v3594_v32, %v3593_v57  ;;  %v3596_v55 = vpop.f32.mrb[54].mxu0  ;;  %v3661_v47 = vpop.f32.mrb[55].mxu1 }
 0x171   :  { %v3597_v51 = vpop.f32.mrb[55].mxu0  ;;  %v3662_v54 = vadd.f32 %v3661_v47, %v3660_v8 }
 0x172   :  { %v2394_v6 = vadd.f32 %v3595_v53, %v5174_v1  ;;  %v3598_v52 = vadd.f32 %v3597_v51, %v3596_v55 }
 0x174   :  { %v2397_v25 = vadd.f32 %v3598_v52, %v5176_v58  ;;  %v5218_v46 = vadd.f32 %v3659_v12, %v2394_v6 }
 0x176   :  { %v5220_v49 = vadd.f32 %v3662_v54, %v2397_v25 }
 0x179   :  { %v3663_v35 = vpop.f32.mrb[56].mxu1 }
 0x17a   :  { %v3599_v24 = vpop.f32.mrb[56].mxu0  ;;  %v3664_v45 = vpop.f32.mrb[57].mxu1 }
 0x17b   :  { %v3600_v63 = vpop.f32.mrb[57].mxu0  ;;  %v3665_v22 = vadd.f32 %v3664_v45, %v3663_v35  ;;  %v3666_v31 = vpop.f32.mrb[58].mxu1 }
 0x17c   :  { %v3601_v2 = vadd.f32 %v3600_v63, %v3599_v24  ;;  %v3602_v14 = vpop.f32.mrb[58].mxu0  ;;  %v3667_v37 = vpop.f32.mrb[59].mxu1 }
 0x17d   :  { %v3603_v4 = vpop.f32.mrb[59].mxu0  ;;  %v3668_v28 = vadd.f32 %v3667_v37, %v3666_v31 }
 0x17e   :  { %v2402_v1 = vadd.f32 %v3601_v2, %v5178_v50  ;;  %v3604_v21 = vadd.f32 %v3603_v4, %v3602_v14 }
 0x180   :  { %v2405_v58 = vadd.f32 %v3604_v21, %v5180_v42  ;;  %v5224_v19 = vadd.f32 %v3665_v22, %v2402_v1 }
 0x182   :  { %v5226_v29 = vadd.f32 %v3668_v28, %v2405_v58 }
 0x184   :  { %v3669_v36 = vpop.f32.mrb[60].mxu1 }
 0x185   :  { %v3605_v9 = vpop.f32.mrb[60].mxu0  ;;  %v3670_v16 = vpop.f32.mrb[61].mxu1 }
 0x186   :  { %v3606_v56 = vpop.f32.mrb[61].mxu0  ;;  %v3671_v3 = vadd.f32 %v3670_v16, %v3669_v36  ;;  %v3672_v30 = vpop.f32.mrb[62].mxu1 }
 0x187   :  { %v3607_v7 = vadd.f32 %v3606_v56, %v3605_v9  ;;  %v3608_v60 = vpop.f32.mrb[62].mxu0  ;;  %v3673_v10 = vpop.f32.mrb[63].mxu1 }
 0x188   :  { %v3609_v5 = vpop.f32.mrb[63].mxu0  ;;  %v3674_v26 = vadd.f32 %v3673_v10, %v3672_v30 }
 0x189   :  { %v2410_v50 = vadd.f32 %v3607_v7, %v5182_v13  ;;  %v3610_v59 = vadd.f32 %v3609_v5, %v3608_v60 }
 0x18b   :  { %v2413_v42 = vadd.f32 %v3610_v59, %v5184_v34  ;;  %v5230_v0 = vadd.f32 %v3671_v3, %v2410_v50  ;;  %v5248_v34 = vld [vmem:[%s5364_s7] ss:$0 sm:$0xff] }
 0x18c   :  { %v3757_v40 = vpop.f32.mrb[64].mxu1 }
 0x18d   :  { %v3725_v62 = vpop.f32.mrb[64].mxu0  ;;  %v5242_v23 = vadd.f32 %v3674_v26, %v2413_v42  ;;  %v2890_v32 = vmul.f32 %v3757_v40, %v5235_v41  ;;  %v2818_v43 = vpop.f32.mrb[65].mxu1 }
 0x18e   :  { %v2556_v13 = vadd.f32 %v3725_v62, %v5194_v48  ;;  %v2547_v57 = vpop.f32.mrb[65].mxu0  ;;  %v2888_v12 = vmul.f32 %v5235_v41, %v2818_v43  ;;  %v3758_v51 = vpop.f32.mrb[66].mxu1 }
 0x18f   :  { %v2548_v53 = vadd.f32 %v2547_v57, %v5188_v39  ;;  %v3726_v55 = vpop.f32.mrb[66].mxu0  ;;  %v2913_v52 = vadd.f32 %v5248_v34, %v2890_v32  ;;  %v2891_v54 = vmul.f32 %v3758_v51, %v5235_v41  ;;  %v2821_v24 = vpop.f32.mrb[67].mxu1 }
 0x190   :  { %v2619_v48 = vmul.f32 %v5240_v20, %v2556_v13  ;;  %v2559_v8 = vadd.f32 %v3726_v55, %v5196_v27  ;;  %v2550_v6 = vpop.f32.mrb[67].mxu0  ;;  %v2911_v35 = vadd.f32 %v5248_v34, %v2888_v12  ;;  %v2889_v2 = vmul.f32 %v5235_v41, %v2821_v24 }
 0x191   :  { %v2617_v47 = vmul.f32 %v5240_v20, %v2548_v53  ;;  %v2551_v25 = vadd.f32 %v2550_v6, %v5190_v17  ;;  %v2914_v31 = vadd.f32 %v5248_v34, %v2891_v54 }
 0x192   :  { %v2642_v39 = vadd.f32 %v5253_v44, %v2619_v48  ;;  %v2620_v63 = vmul.f32 %v5240_v20, %v2559_v8  ;;  %v2912_v1 = vadd.f32 %v5248_v34, %v2889_v2 }
 0x193   :  { %v2640_v27 = vadd.f32 %v5253_v44, %v2617_v47  ;;  %v2618_v45 = vmul.f32 %v5240_v20, %v2551_v25 }
 0x194   :  { %v2929_v14 = vadd.f32 %v2913_v52, %v2642_v39  ;;  %v2643_v22 = vadd.f32 %v5253_v44, %v2620_v63  ;;  %v3761_v9 = vpop.f32.mrb[68].mxu1 }
 0x195   :  { %v2927_v4 = vadd.f32 %v2911_v35, %v2640_v27  ;;  %v2641_v17 = vadd.f32 %v5253_v44, %v2618_v45  ;;  %v3729_v21 = vpop.f32.mrb[68].mxu0  ;;  %v2894_v16 = vmul.f32 %v3761_v9, %v5235_v41  ;;  %v2834_v3 = vpop.f32.mrb[69].mxu1 }
 0x196   :  { %v2945_v37 = vmax.f32 %v2929_v14, 0.0  ;;  %v2930_v28 = vadd.f32 %v2914_v31, %v2643_v22  ;;  %v2572_v58 = vadd.f32 %v3729_v21, %v5206_v15  ;;  %v2563_v36 = vpop.f32.mrb[69].mxu0  ;;  %v2892_v59 = vmul.f32 %v5235_v41, %v2834_v3  ;;  %v3762_v26 = vpop.f32.mrb[70].mxu1 }
 0x197   :  { %v2943_v56 = vmax.f32 %v2927_v4, 0.0  ;;  %v2928_v7 = vadd.f32 %v2912_v1, %v2641_v17  ;;  %v2564_v60 = vadd.f32 %v2563_v36, %v5200_v11  ;;  %v3730_v30 = vpop.f32.mrb[70].mxu0  ;;  %v2917_v62 = vadd.f32 %v5248_v34, %v2894_v16  ;;  %v2837_v57 = vpop.f32.mrb[71].mxu1 }
 0x198   :  { %v2946_v5 = vmax.f32 %v2930_v28, 0.0  ;;  %v2623_v50 = vmul.f32 %v5240_v20, %v2572_v58  ;;  %v2575_v10 = vadd.f32 %v3730_v30, %v5208_v38  ;;  %v2566_v42 = vpop.f32.mrb[71].mxu0  ;;  %v2895_v40 = vmul.f32 %v3762_v26, %v5235_v41 }
 0x199   :  { %v2944_v15 = vmax.f32 %v2928_v7, 0.0  ;;  %v2621_v13 = vmul.f32 %v5240_v20, %v2564_v60  ;;  %v2915_v53 = vadd.f32 %v5248_v34, %v2892_v59  ;;  %v2567_v48 = vadd.f32 %v2566_v42, %v5202_v18 }
 0x19a   :  { %v3380_v11 = vpack.c.bf16 %v2946_v5, %v2945_v37  ;;  %v2646_v32 = vadd.f32 %v5253_v44, %v2623_v50  ;;  %v2624_v43 = vmul.f32 %v5240_v20, %v2575_v10  ;;  %v2918_v51 = vadd.f32 %v5248_v34, %v2895_v40 }
 0x19b   :  { %v3375_v55 = vpack.c.bf16 %v2944_v15, %v2943_v56  ;;  %v2644_v38 = vadd.f32 %v5253_v44, %v2621_v13  ;;  %v2893_v6 = vmul.f32 %v5235_v41, %v2837_v57  ;;  %v2622_v47 = vmul.f32 %v5240_v20, %v2567_v48 }
 0x19c   :  { %3412 = vst [vmem:[%s5366_s8 + $0x8] sm:$0xff] %v3380_v11   ;;  %v2933_v12 = vadd.f32 %v2917_v62, %v2646_v32  ;;  %v2647_v8 = vadd.f32 %v5253_v44, %v2624_v43  ;;  %v3765_v39 = vpop.f32.mrb[72].mxu1 }
 0x19d   :  { %3376 = vst [vmem:[%s5366_s8] sm:$0xff] %v3375_v55   ;;  %v2931_v52 = vadd.f32 %v2915_v53, %v2644_v38  ;;  %v3733_v54 = vpop.f32.mrb[72].mxu0  ;;  %v2645_v63 = vadd.f32 %v5253_v44, %v2622_v47  ;;  %v2916_v2 = vadd.f32 %v5248_v34, %v2893_v6  ;;  %v2898_v27 = vmul.f32 %v3765_v39, %v5235_v41  ;;  %v2850_v14 = vpop.f32.mrb[73].mxu1 }
 0x19e   :  { %v2949_v18 = vmax.f32 %v2933_v12, 0.0  ;;  %v2934_v25 = vadd.f32 %v2918_v51, %v2647_v8  ;;  %v2588_v24 = vadd.f32 %v3733_v54, %v5218_v46  ;;  %v2579_v35 = vpop.f32.mrb[73].mxu0  ;;  %v2896_v17 = vmul.f32 %v5235_v41, %v2850_v14  ;;  %v3766_v46 = vpop.f32.mrb[74].mxu1 }
 0x19f   :  { %v2580_v45 = vadd.f32 %v2579_v35, %v5212_v33  ;;  %v3734_v22 = vpop.f32.mrb[74].mxu0  ;;  %v2932_v37 = vadd.f32 %v2916_v2, %v2645_v63  ;;  %v2921_v28 = vadd.f32 %v5248_v34, %v2898_v27  ;;  %v2899_v9 = vmul.f32 %v3766_v46, %v5235_v41  ;;  %v2853_v36 = vpop.f32.mrb[75].mxu1 }
 0x1a0   :  { %v2950_v31 = vmax.f32 %v2934_v25, 0.0  ;;  %v2627_v4 = vmul.f32 %v5240_v20, %v2588_v24  ;;  %v2591_v1 = vadd.f32 %v3734_v22, %v5220_v49  ;;  %v2582_v21 = vpop.f32.mrb[75].mxu0  ;;  %v2919_v7 = vadd.f32 %v5248_v34, %v2896_v17 }
 0x1a1   :  { %v2625_v58 = vmul.f32 %v5240_v20, %v2580_v45  ;;  %v2947_v60 = vmax.f32 %v2931_v52, 0.0  ;;  %v2948_v3 = vmax.f32 %v2932_v37, 0.0  ;;  %v2583_v30 = vadd.f32 %v2582_v21, %v5214_v61 }
 0x1a2   :  { %v3390_v33 = vpack.c.bf16 %v2950_v31, %v2949_v18  ;;  %v2650_v56 = vadd.f32 %v5253_v44, %v2627_v4  ;;  %v2628_v16 = vmul.f32 %v5240_v20, %v2591_v1  ;;  %v2922_v59 = vadd.f32 %v5248_v34, %v2899_v9 }
 0x1a3   :  { %v2648_v49 = vadd.f32 %v5253_v44, %v2625_v58  ;;  %v2897_v10 = vmul.f32 %v5235_v41, %v2853_v36  ;;  %v3385_v26 = vpack.c.bf16 %v2948_v3, %v2947_v60  ;;  %v2626_v15 = vmul.f32 %v5240_v20, %v2583_v30 }
 0x1a4   :  { %3414 = vst [vmem:[%s5366_s8 + $0x18] sm:$0xff] %v3390_v33   ;;  %v2937_v5 = vadd.f32 %v2921_v28, %v2650_v56  ;;  %v2651_v50 = vadd.f32 %v5253_v44, %v2628_v16  ;;  %v3769_v57 = vpop.f32.mrb[76].mxu1 }
 0x1a5   :  { %v2935_v42 = vadd.f32 %v2919_v7, %v2648_v49  ;;  %v3737_v62 = vpop.f32.mrb[76].mxu0  ;;  %3413 = vst [vmem:[%s5366_s8 + $0x10] sm:$0xff] %v3385_v26   ;;  %v2649_v32 = vadd.f32 %v5253_v44, %v2626_v15  ;;  %v2920_v53 = vadd.f32 %v5248_v34, %v2897_v10  ;;  %v2902_v43 = vmul.f32 %v3769_v57, %v5235_v41  ;;  %v2866_v38 = vpop.f32.mrb[77].mxu1 }
 0x1a6   :  { %v2953_v13 = vmax.f32 %v2937_v5, 0.0  ;;  %v2938_v40 = vadd.f32 %v2922_v59, %v2651_v50  ;;  %v2604_v61 = vadd.f32 %v3737_v62, %v5230_v0  ;;  %v2595_v11 = vpop.f32.mrb[77].mxu0  ;;  %v2900_v0 = vmul.f32 %v5235_v41, %v2866_v38  ;;  %v3770_v6 = vpop.f32.mrb[78].mxu1 }
 0x1a7   :  { %v2596_v55 = vadd.f32 %v2595_v11, %v5224_v19  ;;  %v3738_v48 = vpop.f32.mrb[78].mxu0  ;;  %v2936_v47 = vadd.f32 %v2920_v53, %v2649_v32  ;;  %v2925_v54 = vadd.f32 %v5248_v34, %v2902_v43  ;;  %v2903_v25 = vmul.f32 %v3770_v6, %v5235_v41  ;;  %v2869_v24 = vpop.f32.mrb[79].mxu1 }
 0x1a8   :  { %v2954_v12 = vmax.f32 %v2938_v40, 0.0  ;;  %v2631_v8 = vmul.f32 %v5240_v20, %v2604_v61  ;;  %v2607_v51 = vadd.f32 %v3738_v48, %v5242_v23  ;;  %v2598_v52 = vpop.f32.mrb[79].mxu0  ;;  %v2923_v35 = vadd.f32 %v5248_v34, %v2900_v0 }
 0x1a9   :  { %v2629_v18 = vmul.f32 %v5240_v20, %v2596_v55  ;;  %v2951_v2 = vmax.f32 %v2935_v42, 0.0  ;;  %v2952_v27 = vmax.f32 %v2936_v47, 0.0  ;;  %v2599_v45 = vadd.f32 %v2598_v52, %v5226_v29 }
 0x1aa   :  { %v3400_v19 = vpack.c.bf16 %v2954_v12, %v2953_v13  ;;  %v2654_v39 = vadd.f32 %v5253_v44, %v2631_v8  ;;  %v2632_v63 = vmul.f32 %v5240_v20, %v2607_v51  ;;  %v2926_v31 = vadd.f32 %v5248_v34, %v2903_v25 }
 0x1ab   :  { %v2652_v23 = vadd.f32 %v5253_v44, %v2629_v18  ;;  %v2901_v4 = vmul.f32 %v5235_v41, %v2869_v24  ;;  %v3395_v17 = vpack.c.bf16 %v2952_v27, %v2951_v2  ;;  %v2630_v46 = vmul.f32 %v5240_v20, %v2599_v45 }
 0x1ac   :  { %3416 = vst [vmem:[%s5366_s8 + $0x28] sm:$0xff] %v3400_v19   ;;  %v2941_v14 = vadd.f32 %v2925_v54, %v2654_v39  ;;  %v2655_v22 = vadd.f32 %v5253_v44, %v2632_v63 }
 0x1ad   :  { %v2939_v1 = vadd.f32 %v2923_v35, %v2652_v23  ;;  %3415 = vst [vmem:[%s5366_s8 + $0x20] sm:$0xff] %v3395_v17   ;;  %v2653_v29 = vadd.f32 %v5253_v44, %v2630_v46  ;;  %v2924_v37 = vadd.f32 %v5248_v34, %v2901_v4 }
 0x1ae   :  { %v2942_v21 = vadd.f32 %v2926_v31, %v2655_v22  ;;  %v2957_v28 = vmax.f32 %v2941_v14, 0.0 }
 0x1af   :  { %v2940_v9 = vadd.f32 %v2924_v37, %v2653_v29  ;;  %v2955_v33 = vmax.f32 %v2939_v1, 0.0 }
 0x1b0   :  { %v2958_v58 = vmax.f32 %v2942_v21, 0.0 }
 0x1b1   :  { %v2956_v56 = vmax.f32 %v2940_v9, 0.0 }
 0x1b2   :  { %v3410_v36 = vpack.c.bf16 %v2958_v58, %v2957_v28 }
 0x1b3   :  { %v3405_v41 = vpack.c.bf16 %v2956_v56, %v2955_v33 }
 0x1b4   :  { %3418 = vst [vmem:[%s5366_s8 + $0x38] sm:$0xff] %v3410_v36  }
 0x1b5   :  { %3417 = vst [vmem:[%s5366_s8 + $0x30] sm:$0xff] %v3405_v41  }

</bundles_post_ra>
